<compile_context>
chip_gen: v7x
topology: tpu7x:2x2x1
jax: 0.10.0
libtpu: 0.0.40
codegen_flags: <defaults>
</compile_context>

<pallas_src>
import functools

import jax
import jax.numpy as jnp
from jax.experimental import pallas as pl
from jax.experimental.pallas import tpu as pltpu

N = 256        # number of graph nodes — hard-coded in the PyTorch module (np.eye(256))
LANE = 128     # pad 64-wide feature dims up to one full lane width


def _gcn_kernel(adj_raw_ref, w1_ref, b1_ref, w2_ref, b2_ref, out_ref, edge_ref):
    f32 = jnp.float32
    n = adj_raw_ref.shape[0]

    # ---- fused adjacency preprocessing: edge = D^-1 @ (adj_raw + I) -------
    row = jax.lax.broadcasted_iota(jnp.int32, (n, n), 0)
    col = jax.lax.broadcasted_iota(jnp.int32, (n, n), 1)
    a = adj_raw_ref[...] + (row == col).astype(f32)
    rowsum = jnp.sum(a, axis=1, keepdims=True)                 # >= 1 (diag added)
    r_inv = jnp.where(rowsum > 0, 1.0 / jnp.where(rowsum > 0, rowsum, 1.0), 0.0)
    edge_ref[...] = a * r_inv                                  # normalized adj

    # ---- gcn1: adj @ (I @ W1) + b1 == adj @ W1 + b1, then ReLU ------------
    # (re-read adj from VMEM per dot instead of keeping it live in vregs)
    h = jnp.dot(edge_ref[...], w1_ref[...], preferred_element_type=f32) + b1_ref[...]
    h = jnp.maximum(h, 0.0)
    # eval-mode nn.Dropout(0.3) == identity

    # ---- gcn2: adj @ (h @ W2) + b2 -----------------------------------------
    s = jnp.dot(h, w2_ref[...], preferred_element_type=f32)
    out_ref[...] = jnp.dot(edge_ref[...], s, preferred_element_type=f32) + b2_ref[...]


def normalize_adj(mx):
    """Row-normalize: D^-1 @ mx (matches GCN.normalize, inf -> 0). Reference only."""
    rowsum = jnp.sum(mx, axis=1)
    r_inv = jnp.where(rowsum > 0, 1.0 / jnp.where(rowsum > 0, rowsum, 1.0), 0.0)
    return mx * r_inv[:, None]


def _pad_to(x, shape):
    pads = [(0, t - s) for s, t in zip(x.shape, shape)]
    return jnp.pad(x, pads)


def pad_params(params):
    """One-time lane padding of the 64-wide dims up to 128 (zeros, exact math)."""
    emb_pad = max(LANE, -(-params["w1"].shape[1] // LANE) * LANE)
    out_pad = max(LANE, -(-params["w2"].shape[1] // LANE) * LANE)
    return dict(
        w1=_pad_to(params["w1"], (N, emb_pad)),
        b1=_pad_to(params["b1"], (1, emb_pad)),
        w2=_pad_to(params["w2"], (emb_pad, out_pad)),
        b2=_pad_to(params["b2"], (1, out_pad)),
    )


@functools.partial(jax.jit, static_argnums=2)
def gcn_forward(adj_raw, padded_params, out_dim):
    """Returns (node_embedding [N, out_dim], edge [N, N]) like GCN.forward()."""
    n = adj_raw.shape[0]
    out_pad = padded_params["w2"].shape[1]
    vmem = pl.BlockSpec(memory_space=pltpu.MemorySpace.VMEM)
    node_padded, edge = pl.pallas_call(
        _gcn_kernel,
        out_shape=(
            jax.ShapeDtypeStruct((n, out_pad), jnp.float32),   # node embedding (padded)
            jax.ShapeDtypeStruct((n, n), jnp.float32),         # normalized adj (edge)
        ),
        in_specs=[vmem] * 5,
        out_specs=(vmem, vmem),
    )(adj_raw, padded_params["w1"], padded_params["b1"],
      padded_params["w2"], padded_params["b2"])
    return node_padded[:, :out_dim], edge


def init_params(key, emb_dim, out_dim):
    k1, k2, k3, k4 = jax.random.split(key, 4)

    def f(k, shape, scale=0.1):
        return jax.random.normal(k, shape, jnp.float32) * scale

    return dict(
        w1=f(k1, (N, emb_dim)),        # GraphConvolution(256, emb_dim).weight
        b1=f(k2, (1, emb_dim)),        # .bias (broadcast over rows)
        w2=f(k3, (emb_dim, out_dim)),  # GraphConvolution(emb_dim, 64).weight
        b2=f(k4, (1, out_dim)),        # .bias
    )


if __name__ == "__main__":
    emb_dim = 64
    out_dim = 64                       # hard-coded 64 in GraphConvolution(emb_dim, 64)

    key = jax.random.PRNGKey(0)
    k_adj, k_p = jax.random.split(key)

    # deterministic sparse-ish binary adjacency [256, 256]
    adj_raw = (jax.random.uniform(k_adj, (N, N)) < 0.05).astype(jnp.float32)
    params = init_params(k_p, emb_dim, out_dim)
    padded = pad_params(params)        # once, outside the hot path

    node_emb, edge = jax.block_until_ready(gcn_forward(adj_raw, padded, out_dim))

    # plain-JAX reference (unpadded f32) for a correctness check
    adj_ref = normalize_adj(adj_raw + jnp.eye(N, dtype=jnp.float32))
    h_ref = jnp.maximum(adj_ref @ params["w1"] + params["b1"], 0.0)
    out_ref = adj_ref @ (h_ref @ params["w2"]) + params["b2"]

    assert node_emb.shape == (N, out_dim)
    assert edge.shape == (N, N)
    assert bool(jnp.all(jnp.isfinite(node_emb)))
    assert bool(jnp.allclose(node_emb, out_ref, atol=1e-4, rtol=1e-4))
    assert bool(jnp.allclose(edge, adj_ref, atol=1e-6, rtol=1e-6))
    print("KERNEL_OK")
</pallas_src>

<mosaic_0001>
module attributes {stable_mosaic.version = 11 : i64} {
  func.func @_gcn_kernel(%arg0: memref<256x256xf32, #tpu.memory_space<vmem>>, %arg1: memref<256x128xf32, #tpu.memory_space<vmem>>, %arg2: memref<1x128xf32, #tpu.memory_space<vmem>>, %arg3: memref<128x128xf32, #tpu.memory_space<vmem>>, %arg4: memref<1x128xf32, #tpu.memory_space<vmem>>, %arg5: memref<256x128xf32, #tpu.memory_space<vmem>>, %arg6: memref<256x256xf32, #tpu.memory_space<vmem>>) attributes {dimension_semantics = [], scalar_prefetch = 0 : i64, scratch_operands = 0 : i64, tpu.core_type = #tpu.core_type<tc>} {
    %0 = tpu.iota {dimensions = array<i32: 0>} : vector<256x256xi32>
    %1 = tpu.iota {dimensions = array<i32: 1>} : vector<256x256xi32>
    %c0 = arith.constant 0 : index
    %c0_0 = arith.constant 0 : index
    %2 = vector.load %arg0[%c0, %c0_0] : memref<256x256xf32, #tpu.memory_space<vmem>>, vector<256x256xf32>
    %3 = arith.cmpi eq, %0, %1 : vector<256x256xi32>
    %4 = arith.extui %3 : vector<256x256xi1> to vector<256x256xi32>
    %5 = arith.sitofp %4 : vector<256x256xi32> to vector<256x256xf32>
    %6 = arith.addf %2, %5 : vector<256x256xf32>
    %cst = arith.constant dense<0.000000e+00> : vector<256xf32>
    %7 = vector.multi_reduction <add>, %6, %cst [1] : vector<256x256xf32> to vector<256xf32>
    %8 = vector.shape_cast %7 : vector<256xf32> to vector<256x1xf32>
    %cst_1 = arith.constant 0.000000e+00 : f32
    %9 = vector.broadcast %cst_1 : f32 to vector<256x1xf32>
    %10 = arith.cmpf ogt, %8, %9 : vector<256x1xf32>
    %cst_2 = arith.constant 0.000000e+00 : f32
    %11 = vector.broadcast %cst_2 : f32 to vector<256x1xf32>
    %12 = arith.cmpf ogt, %8, %11 : vector<256x1xf32>
    %cst_3 = arith.constant 1.000000e+00 : f32
    %13 = vector.broadcast %cst_3 : f32 to vector<256x1xf32>
    %14 = arith.select %12, %8, %13 : vector<256x1xi1>, vector<256x1xf32>
    %cst_4 = arith.constant 1.000000e+00 : f32
    %15 = vector.broadcast %cst_4 : f32 to vector<256x1xf32>
    %16 = arith.divf %15, %14 : vector<256x1xf32>
    %cst_5 = arith.constant 0.000000e+00 : f32
    %17 = vector.broadcast %cst_5 : f32 to vector<256x1xf32>
    %18 = arith.select %10, %16, %17 : vector<256x1xi1>, vector<256x1xf32>
    %19 = vector.broadcast %18 : vector<256x1xf32> to vector<256x256xf32>
    %20 = arith.mulf %6, %19 : vector<256x256xf32>
    %c0_6 = arith.constant 0 : index
    %c0_7 = arith.constant 0 : index
    %21 = vector.load %arg6[%c0_6, %c0_7] : memref<256x256xf32, #tpu.memory_space<vmem>>, vector<256x256xf32>
    tpu.vector_store %arg6[%c0_6, %c0_7], %20 {strides = array<i32>} : memref<256x256xf32, #tpu.memory_space<vmem>>, vector<256x256xf32>,
    %c0_8 = arith.constant 0 : index
    %c0_9 = arith.constant 0 : index
    %22 = vector.load %arg6[%c0_8, %c0_9] : memref<256x256xf32, #tpu.memory_space<vmem>>, vector<256x256xf32>
    %c0_10 = arith.constant 0 : index
    %c0_11 = arith.constant 0 : index
    %23 = vector.load %arg1[%c0_10, %c0_11] : memref<256x128xf32, #tpu.memory_space<vmem>>, vector<256x128xf32>
    %cst_12 = arith.constant dense<0.000000e+00> : vector<256x128xf32>
    %24 = tpu.matmul %22, %23, %cst_12 {dimension_numbers = #tpu.dot_dimension_numbers<[1], [0], [0], [1], [0, 0, 1, 1], [], []>} : vector<256x256xf32>, vector<256x128xf32>, vector<256x128xf32> -> vector<256x128xf32>
    %c0_13 = arith.constant 0 : index
    %c0_14 = arith.constant 0 : index
    %25 = vector.load %arg2[%c0_13, %c0_14] : memref<1x128xf32, #tpu.memory_space<vmem>>, vector<1x128xf32>
    %26 = vector.broadcast %25 : vector<1x128xf32> to vector<256x128xf32>
    %27 = arith.addf %24, %26 : vector<256x128xf32>
    %cst_15 = arith.constant 0.000000e+00 : f32
    %28 = vector.broadcast %cst_15 : f32 to vector<256x128xf32>
    %29 = arith.maximumf %27, %28 : vector<256x128xf32>
    %c0_16 = arith.constant 0 : index
    %c0_17 = arith.constant 0 : index
    %30 = vector.load %arg3[%c0_16, %c0_17] : memref<128x128xf32, #tpu.memory_space<vmem>>, vector<128x128xf32>
    %cst_18 = arith.constant dense<0.000000e+00> : vector<256x128xf32>
    %31 = tpu.matmul %29, %30, %cst_18 {dimension_numbers = #tpu.dot_dimension_numbers<[1], [0], [0], [1], [0, 0, 1, 1], [], []>} : vector<256x128xf32>, vector<128x128xf32>, vector<256x128xf32> -> vector<256x128xf32>
    %c0_19 = arith.constant 0 : index
    %c0_20 = arith.constant 0 : index
    %32 = vector.load %arg6[%c0_19, %c0_20] : memref<256x256xf32, #tpu.memory_space<vmem>>, vector<256x256xf32>
    %cst_21 = arith.constant dense<0.000000e+00> : vector<256x128xf32>
    %33 = tpu.matmul %32, %31, %cst_21 {dimension_numbers = #tpu.dot_dimension_numbers<[1], [0], [0], [1], [0, 0, 1, 1], [], []>} : vector<256x256xf32>, vector<256x128xf32>, vector<256x128xf32> -> vector<256x128xf32>
    %c0_22 = arith.constant 0 : index
    %c0_23 = arith.constant 0 : index
    %34 = vector.load %arg4[%c0_22, %c0_23] : memref<1x128xf32, #tpu.memory_space<vmem>>, vector<1x128xf32>
    %35 = vector.broadcast %34 : vector<1x128xf32> to vector<256x128xf32>
    %36 = arith.addf %33, %35 : vector<256x128xf32>
    %c0_24 = arith.constant 0 : index
    %c0_25 = arith.constant 0 : index
    %37 = vector.load %arg5[%c0_24, %c0_25] : memref<256x128xf32, #tpu.memory_space<vmem>>, vector<256x128xf32>
    tpu.vector_store %arg5[%c0_24, %c0_25], %36 {strides = array<i32>} : memref<256x128xf32, #tpu.memory_space<vmem>>, vector<256x128xf32>,
    return
  }
}

</mosaic_0001>

<bundles_post_ra>
// kernel: gcn_forward.1
= control target key start
LH: loop header
LB: loop body
LE: loop exit
PB: predicated region body
PF: predicated region fallthrough
CT: control target
= control target key end

     0   :  { %12 = vsyncpa [#allocation3], 0  ;;  %s3403_s0 = inlined_call_operand.hbm [shape: f32[256,256], index: 0, kind: input, shape index: {}]   ;;  %s3404_s1 = inlined_call_operand.hbm [shape: f32[256,128], index: 1, kind: input, shape index: {}]   ;;  %s3405_s2 = inlined_call_operand.vmem [shape: f32[1,128], index: 2, kind: input, shape index: {}]   ;;  %s3406_s3 = inlined_call_operand.hbm [shape: f32[128,128], index: 3, kind: input, shape index: {}]   ;;  %s3407_s4 = inlined_call_operand.vmem [shape: f32[1,128], index: 4, kind: input, shape index: {}]   ;;  %s3408_s5 = inlined_call_operand.vmem [shape: f32[256,128], index: 5, kind: output, shape index: {0}]   ;;  %s3409_s6 = inlined_call_operand.hbm [shape: f32[256,256], index: 6, kind: output, shape index: {1}]  }
   0x1   :  { %13 = vsyncpa [#allocation6], 0 }
   0x2   :  { %14 = vsyncpa [#allocation4], 0  ;;  %s2206_s21 = smov [#allocation5]   ;;  %s2112_s25 = scalar_lea.hbm %s3404_s1, 4096 }
   0x3   :  { %s32_s22 = sshll.u32 %s2206_s21, 4  ;;  %p2113_p0 = scmp.ne.s32.totalorder %s3404_s1, %s2112_s25  ;;  %s33_s22 = int_to_ptr.vmem [resolvable:$true] %s32_s22 }
   0x4   :  { %p2116_p1 = scmp.lt.u32.totalorder %s2112_s25, %s3404_s1 }
   0x6   :  { %p2118_p2 = pnand %p2116_p1, %p2113_p0 }
   0x8   :  { %2121 = shalt.err (!%p2118_p2)
}
   0x9   :  { %s2122_s30 = scalar_lea.vmem %s33_s22, 4096  ;;  %p2127_p4 = scmp.lt.s32.totalorder %s33_s22, %s33_s22 }
   0xa   :  { %p2123_p3 = scmp.ne.s32.totalorder %s33_s22, %s2122_s30  ;;  %p2128_p5 = scmp.lt.s32.totalorder %s2122_s30, %s2122_s30 }
   0xc   :  { %p2129_p6 = por %p2128_p5, %p2127_p4 }
   0xe   :  { %p2130_p7 = pnand %p2129_p6, %p2123_p3 }
  0x10   :  { %2133 = shalt.err (!%p2130_p7)
}
  0x11   :  { %s2207_s7 = smov 128   ;;  %s2208_s8 = smov 8  }
  0x12   :  { %38 = dma.hbm_to_vmem [thread:$0]  %s3404_s1, 4096, %s33_s22, [#allocation6], %s2207_s7, %s2207_s7, %s2208_s8  }
  0x13   :  { %s2209_s11 = smov [#allocation2]   ;;  %s2134_s15 = scalar_lea.hbm %s3403_s0, 8192 }
  0x14   :  { %s20_s12 = sshll.u32 %s2209_s11, 4  ;;  %p2135_p8 = scmp.ne.s32.totalorder %s3403_s0, %s2134_s15  ;;  %s21_s12 = int_to_ptr.vmem [resolvable:$true] %s20_s12 }
  0x15   :  { %p2138_p9 = scmp.lt.u32.totalorder %s2134_s15, %s3403_s0 }
  0x17   :  { %p2140_p10 = pnand %p2138_p9, %p2135_p8 }
  0x19   :  { %2143 = shalt.err (!%p2140_p10)
}
  0x1a   :  { %s2144_s20 = scalar_lea.vmem %s21_s12, 8192  ;;  %p2149_p12 = scmp.lt.s32.totalorder %s21_s12, %s21_s12 }
  0x1b   :  { %p2145_p11 = scmp.ne.s32.totalorder %s21_s12, %s2144_s20  ;;  %p2150_p13 = scmp.lt.s32.totalorder %s2144_s20, %s2144_s20 }
  0x1d   :  { %p2151_p0 = por %p2150_p13, %p2149_p12 }
  0x1f   :  { %p2152_p1 = pnand %p2151_p0, %p2145_p11 }
  0x21   :  { %2155 = shalt.err (!%p2152_p1)
}
  0x22   :  { %s2210_s1 = smov 256   ;;  %s2211_s21 = smov 16  }
  0x23   :  { %26 = dma.hbm_to_vmem [thread:$0]  %s3403_s0, 8192, %s21_s12, [#allocation3], %s2210_s1, %s2210_s1, %s2211_s21  }
  0x24   :  { %s2212_s24 = smov [#allocation7]   ;;  %s2156_s28 = scalar_lea.hbm %s3406_s3, 2048 }
  0x25   :  { %s46_s25 = sshll.u32 %s2212_s24, 4  ;;  %p2157_p2 = scmp.ne.s32.totalorder %s3406_s3, %s2156_s28  ;;  %s47_s25 = int_to_ptr.vmem [resolvable:$true] %s46_s25 }
  0x26   :  { %p2160_p3 = scmp.lt.u32.totalorder %s2156_s28, %s3406_s3 }
  0x28   :  { %p2162_p4 = pnand %p2160_p3, %p2157_p2 }
  0x2a   :  { %2165 = shalt.err (!%p2162_p4)
}
  0x2b   :  { %s2166_s11 = scalar_lea.vmem %s47_s25, 2048  ;;  %p2171_p6 = scmp.lt.s32.totalorder %s47_s25, %s47_s25 }
  0x2c   :  { %p2167_p5 = scmp.ne.s32.totalorder %s47_s25, %s2166_s11  ;;  %p2172_p7 = scmp.lt.s32.totalorder %s2166_s11, %s2166_s11 }
  0x2e   :  { %p2173_p8 = por %p2172_p7, %p2171_p6 }
  0x30   :  { %p2174_p9 = pnand %p2173_p8, %p2167_p5 }
  0x32   :  { %2177 = shalt.err (!%p2174_p9)
}
  0x33   :  { %52 = dma.hbm_to_vmem [thread:$0]  %s3406_s3, 2048, %s47_s25, [#allocation6], %s2207_s7, %s2207_s7, %s2208_s8  }
  0x34   :  { %2200 = dma.done.wait [#allocation3], 8192  }
  0x35   :  { %2201 = vsyncadd [#allocation3], 4294959104 }
  0x36   :  { %2202 = dma.done.wait [#allocation6], 6144  }
  0x37   :  { %2203 = vsyncadd [#allocation6], 4294961152  ;;  %v64_v0 = vlaneseq  ;;  %v3410_v1 = vmov 0.0|0.0   ;;  %v3418_v7 = vmov 0.0   ;;  %v104_v13 = vld [vmem:[#allocation2 + $0x20] sm:$0xff]  ;;  %v2314_v14 = vld [vmem:[#allocation2 + $0x28] sm:$0xff] }
  0x38   :  { %1853 = vmatprep.subr.bf16.mxu0 %v3410_v1  ;;  %v100_v16 = vld [vmem:[#allocation2] sm:$0xff]  ;;  %v2322_v20 = vld [vmem:[#allocation2 + $0x8] sm:$0xff]  ;;  %v106_v22 = vld [vmem:[#allocation2 + $0x30] sm:$0xff] }
  0x39   :  { %v2297_v2 = vshrl.u32 %v64_v0, 7  ;;  %v2299_v3 = vand.u32 127, %v64_v0  ;;  %v2326_v23 = vld [vmem:[#allocation2 + $0x38] sm:$0xff]  ;;  %v102_v26 = vld [vmem:[#allocation2 + $0x10] sm:$0xff]  ;;  %v108_v33 = vld [vmem:[#allocation2 + $0x40] sm:$0xff] }
  0x3a   :  { %v2332_v27 = vld [vmem:[#allocation2 + $0x18] sm:$0xff]  ;;  %v110_v28 = vld [vmem:[#allocation2 + $0x50] sm:$0xff]  ;;  %v112_v38 = vld [vmem:[#allocation2 + $0x60] sm:$0xff] }
  0x3b   :  { %v67_v4 = vadd.s32 16, %v2297_v2  ;;  %vm164_vm0 = vcmp.eq.s32.totalorder %v2297_v2, %v2299_v3  ;;  %v68_v5 = vadd.s32 24, %v2297_v2  ;;  %v66_v6 = vadd.s32 8, %v2297_v2  ;;  %v2353_v41 = vld [vmem:[#allocation2 + $0x58] sm:$0xff]  ;;  %v2355_v42 = vld [vmem:[#allocation2 + $0x48] sm:$0xff]  ;;  %v114_v43 = vld [vmem:[#allocation2 + $0x70] sm:$0xff] }
  0x3c   :  { %v1691_v8 = vsel %vm164_vm0, 1.0, %v3418_v7  ;;  %v70_v9 = vadd.s32 40, %v2297_v2  ;;  %v69_v10 = vadd.s32 32, %v2297_v2  ;;  %v71_v11 = vadd.s32 48, %v2297_v2  ;;  %v2369_v51 = vld [vmem:[#allocation2 + $0x68] sm:$0xff]  ;;  %v2373_v53 = vld [vmem:[#allocation2 + $0x78] sm:$0xff] }
  0x3d   :  { %vm168_vm1 = vcmp.eq.s32.totalorder %v67_v4, %v2299_v3  ;;  %vm170_vm2 = vcmp.eq.s32.totalorder %v68_v5, %v2299_v3  ;;  %vm166_vm3 = vcmp.eq.s32.totalorder %v66_v6, %v2299_v3  ;;  %v72_v12 = vadd.s32 56, %v2297_v2  ;;  %v116_v54 = vld [vmem:[#allocation2 + $0x80] sm:$0xff]  ;;  %v118_v56 = vld [vmem:[#allocation2 + $0x90] sm:$0xff]  ;;  %v2390_v5 = vld [vmem:[#allocation2 + $0x88] sm:$0xff] }
  0x3e   :  { %v1693_v15 = vsel %vm168_vm1, 1.0, %v3418_v7  ;;  %v1694_v17 = vsel %vm170_vm2, 1.0, %v3418_v7  ;;  %v1692_v18 = vsel %vm166_vm3, 1.0, %v3418_v7  ;;  %vm174_vm4 = vcmp.eq.s32.totalorder %v70_v9, %v2299_v3  ;;  %v120_v0 = vld [vmem:[#allocation2 + $0xa0] sm:$0xff]  ;;  %v2392_v6 = vld [vmem:[#allocation2 + $0x98] sm:$0xff] }
  0x3f   :  { %v2320_v19 = vadd.f32 %v1693_v15, %v104_v13  ;;  %v2324_v21 = vadd.f32 %v1691_v8, %v100_v16  ;;  %v1696_v24 = vsel %vm174_vm4, 1.0, %v3418_v7  ;;  %vm172_vm5 = vcmp.eq.s32.totalorder %v69_v10, %v2299_v3  ;;  %v122_v8 = vld [vmem:[#allocation2 + $0xb0] sm:$0xff]  ;;  %v2405_v16 = vld [vmem:[#allocation2 + $0xa8] sm:$0xff] }
  0x40   :  { %v2330_v25 = vadd.f32 %v1694_v17, %v106_v22  ;;  %v1695_v29 = vsel %vm172_vm5, 1.0, %v3418_v7  ;;  %vm176_vm6 = vcmp.eq.s32.totalorder %v71_v11, %v2299_v3  ;;  %v2340_v32 = vadd.f32 %v1692_v18, %v102_v26  ;;  %v2409_v18 = vld [vmem:[#allocation2 + $0xb8] sm:$0xff]  ;;  %v124_v22 = vld [vmem:[#allocation2 + $0xc0] sm:$0xff]  ;;  %v126_v26 = vld [vmem:[#allocation2 + $0xd0] sm:$0xff] }
  0x41   :  { %v426_v30 = vadd.f32 %v2320_v19, %v2314_v14  ;;  %v420_v31 = vadd.f32 %v2324_v21, %v2322_v20  ;;  %vm178_vm7 = vcmp.eq.s32.totalorder %v72_v12, %v2299_v3  ;;  %v2345_v35 = vadd.f32 %v1696_v24, %v110_v28 }
  0x42   :  { %v429_v34 = vadd.f32 %v2330_v25, %v2326_v23  ;;  %v423_v36 = vadd.f32 %v2340_v32, %v2332_v27  ;;  %v2349_v37 = vadd.f32 %v1695_v29, %v108_v33  ;;  %v1697_v39 = vsel %vm176_vm6, 1.0, %v3418_v7 }
  0x43   :  { %427 = vadd.xlane.f32.xlu1 %v426_v30  ;;  %421 = vadd.xlane.f32.xlu0 %v420_v31  ;;  %v73_v40 = vadd.s32 64, %v2297_v2  ;;  %v1698_v44 = vsel %vm178_vm7, 1.0, %v3418_v7  ;;  %v74_v45 = vadd.s32 72, %v2297_v2  ;;  %v75_v46 = vadd.s32 80, %v2297_v2 }
  0x44   :  { %v76_v47 = vadd.s32 88, %v2297_v2  ;;  %v2362_v48 = vadd.f32 %v1697_v39, %v112_v38  ;;  %v435_v49 = vadd.f32 %v2345_v35, %v2353_v41  ;;  %v432_v50 = vadd.f32 %v2349_v37, %v2355_v42  ;;  %v128_v39 = vld [vmem:[#allocation2 + $0xe0] sm:$0xff] }
  0x45   :  { %vm180_vm8 = vcmp.eq.s32.totalorder %v73_v40, %v2299_v3  ;;  %vm182_vm9 = vcmp.eq.s32.totalorder %v74_v45, %v2299_v3  ;;  %v2371_v52 = vadd.f32 %v1698_v44, %v114_v43  ;;  %vm184_vm10 = vcmp.eq.s32.totalorder %v75_v46, %v2299_v3  ;;  %v2429_v43 = vld [vmem:[#allocation2 + $0xc8] sm:$0xff]  ;;  %v130_v44 = vld [vmem:[#allocation2 + $0xf0] sm:$0xff] }
  0x46   :  { %v1699_v55 = vsel %vm180_vm8, 1.0, %v3418_v7  ;;  %v1700_v57 = vsel %vm182_vm9, 1.0, %v3418_v7  ;;  %vm186_vm11 = vcmp.eq.s32.totalorder %v76_v47, %v2299_v3  ;;  %v77_v58 = vadd.s32 96, %v2297_v2 }
  0x47   :  { %430 = vadd.xlane.f32.xlu1 %v429_v34  ;;  %424 = vadd.xlane.f32.xlu0 %v423_v36  ;;  %v78_v59 = vadd.s32 104, %v2297_v2  ;;  %v438_v60 = vadd.f32 %v2362_v48, %v2369_v51  ;;  %v441_v61 = vadd.f32 %v2371_v52, %v2373_v53  ;;  %v2385_v62 = vadd.f32 %v1699_v55, %v116_v54  ;;  %v2444_v55 = vld [vmem:[#allocation2 + $0xe8] sm:$0xff] }
  0x48   :  { %v2387_v63 = vadd.f32 %v1700_v57, %v118_v56  ;;  %v1701_v4 = vsel %vm184_vm10, 1.0, %v3418_v7  ;;  %v1702_v9 = vsel %vm186_vm11, 1.0, %v3418_v7  ;;  %v79_v10 = vadd.s32 112, %v2297_v2  ;;  %v2448_v57 = vld [vmem:[#allocation2 + $0xf8] sm:$0xff] }
  0x49   :  { %vm188_vm12 = vcmp.eq.s32.totalorder %v77_v58, %v2299_v3  ;;  %vm190_vm13 = vcmp.eq.s32.totalorder %v78_v59, %v2299_v3  ;;  %v80_v11 = vadd.s32 120, %v2297_v2  ;;  %v2399_v12 = vadd.f32 %v1701_v4, %v120_v0  ;;  %v133_v58 = vld [vmem:[#allocation2 + $0x108] sm:$0xff] }
  0x4a   :  { %v444_v13 = vadd.f32 %v2385_v62, %v2390_v5  ;;  %v447_v15 = vadd.f32 %v2387_v63, %v2392_v6  ;;  %v2407_v17 = vadd.f32 %v1702_v9, %v122_v8  ;;  %v1703_v24 = vsel %vm188_vm12, 1.0, %v3418_v7 }
  0x4b   :  { %436 = vadd.xlane.f32.xlu1 %v435_v49  ;;  %433 = vadd.xlane.f32.xlu0 %v432_v50  ;;  %v1704_v28 = vsel %vm190_vm13, 1.0, %v3418_v7  ;;  %vm192_vm14 = vcmp.eq.s32.totalorder %v79_v10, %v2299_v3  ;;  %vm194_vm15 = vcmp.eq.s32.totalorder %v80_v11, %v2299_v3  ;;  %v81_v29 = vadd.s32 128, %v2297_v2 }
  0x4c   :  { %v2417_v30 = vadd.s32 128, %v2299_v3  ;;  %v82_v31 = vadd.s32 136, %v2297_v2  ;;  %v450_v33 = vadd.f32 %v2399_v12, %v2405_v16  ;;  %v453_v34 = vadd.f32 %v2407_v17, %v2409_v18  ;;  %v2431_v3 = vld [vmem:[#allocation2 + $0xd8] sm:$0xff] }
  0x4d   :  { %v2424_v36 = vadd.f32 %v1703_v24, %v124_v22  ;;  %v2426_v38 = vadd.f32 %v1704_v28, %v126_v26  ;;  %v1705_v40 = vsel %vm192_vm14, 1.0, %v3418_v7  ;;  %v1706_v45 = vsel %vm194_vm15, 1.0, %v3418_v7  ;;  %v868_v22 = vld [vmem:[#allocation5] sm:$0xff]  ;;  %v869_v24 = vld [vmem:[#allocation5 + $0x8] sm:$0xff]  ;;  %v2467_v28 = vld [vmem:[#allocation2 + $0x110] sm:$0xff] }
  0x4e   :  { %v83_v46 = vadd.s32 144, %v2297_v2  ;;  %vm197_vm0 = vcmp.eq.s32.totalorder %v81_v29, %v2417_v30  ;;  %vm199_vm1 = vcmp.eq.s32.totalorder %v82_v31, %v2417_v30  ;;  %v84_v47 = vadd.s32 152, %v2297_v2  ;;  %v2465_v26 = vld [vmem:[#allocation2 + $0x100] sm:$0xff]  ;;  %v139_v29 = vld [vmem:[#allocation2 + $0x138] sm:$0xff] }
  0x4f   :  { %439 = vadd.xlane.f32.xlu0 %v438_v60  ;;  %442 = vadd.xlane.f32.xlu1 %v441_v61  ;;  %v2438_v49 = vadd.f32 %v1705_v40, %v128_v39  ;;  %v456_v50 = vadd.f32 %v2424_v36, %v2429_v43  ;;  %v459_v54 = vadd.f32 %v2426_v38, %v2431_v3  ;;  %v1707_v59 = vsel %vm197_vm0, 1.0, %v3418_v7  ;;  %v135_v60 = vld [vmem:[#allocation2 + $0x118] sm:$0xff]  ;;  %v870_v39 = vld [vmem:[#allocation5 + $0x10] sm:$0xff] }
  0x50   :  { %v2446_v56 = vadd.f32 %v1706_v45, %v130_v44  ;;  %v1708_v61 = vsel %vm199_vm1, 1.0, %v3418_v7  ;;  %vm201_vm2 = vcmp.eq.s32.totalorder %v83_v46, %v2417_v30  ;;  %v85_v0 = vadd.s32 160, %v2297_v2  ;;  %v871_v40 = vld [vmem:[#allocation5 + $0x18] sm:$0xff] }
  0x51   :  { %vm203_vm3 = vcmp.eq.s32.totalorder %v84_v47, %v2417_v30  ;;  %v86_v4 = vadd.s32 168, %v2297_v2  ;;  %v462_v8 = vadd.f32 %v2438_v49, %v2444_v55  ;;  %v2460_v10 = vadd.f32 %v1707_v59, %v133_v58  ;;  %v2485_v59 = vld [vmem:[#allocation2 + $0x130] sm:$0xff] }
  0x52   :  { %v465_v9 = vadd.f32 %v2446_v56, %v2448_v57  ;;  %v2462_v11 = vadd.f32 %v1708_v61, %v135_v60  ;;  %v1710_v31 = vsel %vm203_vm3, 1.0, %v3418_v7  ;;  %vm205_vm4 = vcmp.eq.s32.totalorder %v85_v0, %v2417_v30  ;;  %3442 = vst [vmem:[#allocation16_spill] sm:$0xff] %v2485_v59  ;;  %v141_v60 = vld [vmem:[#allocation2 + $0x148] sm:$0xff]  ;;  %v143_v61 = vld [vmem:[#allocation2 + $0x158] sm:$0xff] }
  0x53   :  { %445 = vadd.xlane.f32.xlu0 %v444_v13  ;;  %448 = vadd.xlane.f32.xlu1 %v447_v15  ;;  %v137_v13 = vld [vmem:[#allocation2 + $0x128] sm:$0xff]  ;;  %v1709_v15 = vsel %vm201_vm2, 1.0, %v3418_v7  ;;  %vm207_vm5 = vcmp.eq.s32.totalorder %v86_v4, %v2417_v30  ;;  %v1854_v45 = vpack.c.bf16 %v869_v24, %v868_v22  ;;  %v468_v46 = vadd.f32 %v2460_v10, %v2465_v26 }
  0x54   :  { %3438 = vst [vmem:[#allocation12_spill] sm:$0xff] %v2462_v11  ;;  %v2474_v44 = vadd.f32 %v1709_v15, %v137_v13  ;;  %v471_v47 = vadd.f32 %v2462_v11, %v2467_v28  ;;  %v1711_v58 = vsel %vm205_vm4, 1.0, %v3418_v7  ;;  %v1712_v0 = vsel %vm207_vm5, 1.0, %v3418_v7  ;;  %v872_v15 = vld [vmem:[#allocation5 + $0x20] sm:$0xff]  ;;  %v873_v22 = vld [vmem:[#allocation5 + $0x28] sm:$0xff]  ;;  %v147_v11 = vld [vmem:[#allocation2 + $0x178] sm:$0xff] }
  0x55   :  { %1855 = vmatpush1.bf16.msra.mxu0 %v1854_v45  ;;  %v90_v13 = vadd.s32 200, %v2297_v2  ;;  %v2506_v45 = vld [vmem:[#allocation2 + $0x140] sm:$0xff] }
  0x56   :  { %3439 = vst [vmem:[#allocation13_spill] sm:$0xff] %v2474_v44  ;;  %1856 = vmatprep.subr.bf16.mxu0 %v3410_v1  ;;  %3445 = vst [vmem:[#allocation19_spill] sm:$0xff] %v2506_v45  ;;  %v2508_v1 = vld [vmem:[#allocation2 + $0x150] sm:$0xff] }
  0x57   :  { %451 = vadd.xlane.f32.xlu0 %v450_v33  ;;  %454 = vadd.xlane.f32.xlu1 %v453_v34  ;;  %v87_v33 = vadd.s32 176, %v2297_v2  ;;  %v88_v34 = vadd.s32 184, %v2297_v2  ;;  %3446 = vst [vmem:[#allocation20_spill] sm:$0xff] %v2508_v1  ;;  %vm215_vm9 = vcmp.eq.s32.totalorder %v90_v13, %v2417_v30 }
  0x59   :  { %vm209_vm6 = vcmp.eq.s32.totalorder %v87_v33, %v2417_v30  ;;  %vm211_vm7 = vcmp.eq.s32.totalorder %v88_v34, %v2417_v30  ;;  %v92_v33 = vadd.s32 216, %v2297_v2 }
  0x5b   :  { %457 = vadd.xlane.f32.xlu0 %v456_v50  ;;  %460 = vadd.xlane.f32.xlu1 %v459_v54  ;;  %v2480_v50 = vld [vmem:[#allocation2 + $0x120] sm:$0xff]  ;;  %v2482_v54 = vadd.f32 %v1710_v31, %v139_v29  ;;  %v2499_v29 = vadd.f32 %v1711_v58, %v141_v60  ;;  %v2501_v31 = vadd.f32 %v1712_v0, %v143_v61  ;;  %v91_v58 = vadd.s32 208, %v2297_v2  ;;  %v874_v61 = vld [vmem:[#allocation5 + $0x30] sm:$0xff]  ;;  %v875_v0 = vld [vmem:[#allocation5 + $0x38] sm:$0xff] }
  0x5c   :  { %3440 = vst [vmem:[#allocation14_spill] sm:$0xff] %v2480_v50  ;;  %v474_v24 = vadd.f32 %v2474_v44, %v2480_v50  ;;  %v3447_v60 = vmov 0.0|0.0   ;;  %v2529_v44 = vld [vmem:[#allocation2 + $0x160] sm:$0xff]  ;;  %v2531_v50 = vld [vmem:[#allocation2 + $0x170] sm:$0xff]  ;;  %vm219_vm11 = vcmp.eq.s32.totalorder %v92_v33, %v2417_v30 }
  0x5d   :  { %3441 = vst [vmem:[#allocation15_spill] sm:$0xff] %v2482_v54  ;;  %v477_v4 = vadd.f32 %v2482_v54, %v2485_v59  ;;  %3443 = vst [vmem:[#allocation17_spill] sm:$0xff] %v2499_v29  ;;  %v480_v34 = vadd.f32 %v2499_v29, %v2506_v45  ;;  %vm217_vm10 = vcmp.eq.s32.totalorder %v91_v58, %v2417_v30  ;;  %v155_v45 = vld [vmem:[#allocation2 + $0x1b8] sm:$0xff] }
  0x5e   :  { %3444 = vst [vmem:[#allocation18_spill] sm:$0xff] %v2501_v31  ;;  %3450 = vst [vmem:[#allocation23_spill] sm:$0xff] %v2529_v44 }
  0x5f   :  { %463 = vadd.xlane.f32.xlu0 %v462_v8  ;;  %466 = vadd.xlane.f32.xlu1 %v465_v9  ;;  %v89_v8 = vadd.s32 192, %v2297_v2  ;;  %v1857_v9 = vpack.c.bf16 %v871_v40, %v870_v39  ;;  %v145_v39 = vld [vmem:[#allocation2 + $0x168] sm:$0xff]  ;;  %v1713_v40 = vsel %vm209_vm6, 1.0, %v3418_v7  ;;  %3451 = vst [vmem:[#allocation24_spill] sm:$0xff] %v2531_v50 }
  0x60   :  { %v2518_v54 = vadd.f32 %v1713_v40, %v145_v39  ;;  %v151_v39 = vld [vmem:[#allocation2 + $0x198] sm:$0xff]  ;;  %v1863_v40 = vpack.c.bf16 %v875_v0, %v874_v61  ;;  %v2547_v61 = vld [vmem:[#allocation2 + $0x180] sm:$0xff]  ;;  %v2551_v0 = vld [vmem:[#allocation2 + $0x190] sm:$0xff] }
  0x61   :  { %vm213_vm8 = vcmp.eq.s32.totalorder %v89_v8, %v2417_v30  ;;  %1858 = vmatpush1.bf16.msra.mxu0 %v1857_v9  ;;  %v483_v9 = vadd.f32 %v2501_v31, %v2508_v1  ;;  %v876_v8 = vld [vmem:[#allocation5 + $0x40] sm:$0xff]  ;;  %v3452_v1 = vmov 0.0  }
  0x62   :  { %1859 = vmatprep.subr.bf16.mxu0 %v3447_v60  ;;  %3448 = vst [vmem:[#allocation21_spill] sm:$0xff] %v2518_v54  ;;  %v1715_v59 = vsel %vm213_vm8, 1.0, %v3418_v7  ;;  %v486_v13 = vadd.f32 %v2518_v54, %v2529_v44  ;;  %v1717_v29 = vsel %vm217_vm10, 1.0, %v3452_v1  ;;  %v2575_v54 = vld [vmem:[#allocation2 + $0x1b0] sm:$0xff]  ;;  %v159_v44 = vld [vmem:[#allocation2 + $0x1d8] sm:$0xff] }
  0x63   :  { %469 = vadd.xlane.f32.xlu0 %v468_v46  ;;  %472 = vadd.xlane.f32.xlu1 %v471_v47  ;;  %v1714_v46 = vsel %vm211_vm7, 1.0, %v3418_v7  ;;  %v1860_v47 = vpack.c.bf16 %v873_v22, %v872_v15  ;;  %v149_v22 = vld [vmem:[#allocation2 + $0x188] sm:$0xff]  ;;  %3454 = vst [vmem:[#allocation26_spill] sm:$0xff] %v2575_v54 }
  0x64   :  { %v2524_v15 = vadd.f32 %v1714_v46, %v147_v11  ;;  %v94_v11 = vadd.s32 232, %v2297_v2  ;;  %v877_v46 = vld [vmem:[#allocation5 + $0x48] sm:$0xff]  ;;  %v2541_v31 = vadd.f32 %v1715_v59, %v149_v22  ;;  %v1718_v59 = vsel %vm219_vm11, 1.0, %v3452_v1 }
  0x65   :  { %1861 = vmatpush1.bf16.msra.mxu0 %v1860_v47  ;;  %v96_v22 = vadd.s32 248, %v2297_v2 }
  0x66   :  { %3449 = vst [vmem:[#allocation22_spill] sm:$0xff] %v2524_v15  ;;  %1862 = vmatprep.subr.bf16.mxu0 %v3447_v60  ;;  %v489_v47 = vadd.f32 %v2524_v15, %v2531_v50  ;;  %vm223_vm13 = vcmp.eq.s32.totalorder %v94_v11, %v2417_v30  ;;  %v492_v15 = vadd.f32 %v2541_v31, %v2547_v61  ;;  %v2573_v50 = vld [vmem:[#allocation2 + $0x1a0] sm:$0xff] }
  0x67   :  { %475 = vadd.xlane.f32.xlu0 %v474_v24  ;;  %478 = vadd.xlane.f32.xlu1 %v477_v4  ;;  %v1716_v24 = vsel %vm215_vm9, 1.0, %v3418_v7  ;;  %v93_v4 = vadd.s32 224, %v2297_v2  ;;  %v153_v7 = vld [vmem:[#allocation2 + $0x1a8] sm:$0xff]  ;;  %vm227_vm15 = vcmp.eq.s32.totalorder %v96_v22, %v2417_v30 }
  0x68   :  { %v2549_v58 = vadd.f32 %v1716_v24, %v151_v39  ;;  %v878_v39 = vld [vmem:[#allocation5 + $0x50] sm:$0xff]  ;;  %v879_v24 = vld [vmem:[#allocation5 + $0x58] sm:$0xff] }
  0x69   :  { %vm221_vm12 = vcmp.eq.s32.totalorder %v93_v4, %v2417_v30  ;;  %1864 = vmatpush1.bf16.msra.mxu0 %v1863_v40  ;;  %v2566_v40 = vadd.f32 %v1717_v29, %v153_v7  ;;  %v880_v7 = vld [vmem:[#allocation5 + $0x60] sm:$0xff]  ;;  %v881_v29 = vld [vmem:[#allocation5 + $0x68] sm:$0xff] }
  0x6a   :  { %1865 = vmatprep.subr.bf16.mxu0 %v3447_v60  ;;  %v495_v33 = vadd.f32 %v2549_v58, %v2551_v0 }
  0x6b   :  { %481 = vadd.xlane.f32.xlu0 %v480_v34  ;;  %484 = vadd.xlane.f32.xlu1 %v483_v9  ;;  %v1866_v34 = vpack.c.bf16 %v877_v46, %v876_v8  ;;  %v95_v9 = vadd.s32 240, %v2297_v2  ;;  %v2568_v8 = vadd.f32 %v1718_v59, %v155_v45  ;;  %v157_v46 = vld [vmem:[#allocation2 + $0x1c8] sm:$0xff]  ;;  %v1719_v2 = vsel %vm221_vm12, 1.0, %v3452_v1  ;;  %v2589_v59 = vld [vmem:[#allocation2 + $0x1c0] sm:$0xff] }
  0x6c   :  { %v2583_v45 = vadd.f32 %v1719_v2, %v157_v46  ;;  %v498_v4 = vadd.f32 %v2566_v40, %v2573_v50  ;;  %3456 = vst [vmem:[#allocation28_spill] sm:$0xff] %v2589_v59  ;;  %v883_v46 = vld [vmem:[#allocation5 + $0x78] sm:$0xff] }
  0x6d   :  { %3453 = vst [vmem:[#allocation25_spill] sm:$0xff] %v2568_v8  ;;  %1867 = vmatpush1.bf16.msra.mxu0 %v1866_v34  ;;  %vm225_vm14 = vcmp.eq.s32.totalorder %v95_v9, %v2417_v30  ;;  %v501_v11 = vadd.f32 %v2568_v8, %v2575_v54  ;;  %v2593_v9 = vld [vmem:[#allocation2 + $0x1d0] sm:$0xff]  ;;  %v161_v30 = vld [vmem:[#allocation2 + $0x1e8] sm:$0xff]  ;;  %v2606_v54 = vld [vmem:[#allocation2 + $0x1e0] sm:$0xff] }
  0x6e   :  { %1868 = vmatprep.subr.bf16.mxu0 %v3447_v60  ;;  %3455 = vst [vmem:[#allocation27_spill] sm:$0xff] %v2583_v45  ;;  %3458 = vst [vmem:[#allocation30_spill] sm:$0xff] %v2593_v9  ;;  %v1721_v22 = vsel %vm225_vm14, 1.0, %v3452_v1  ;;  %v504_v2 = vadd.f32 %v2583_v45, %v2589_v59 }
  0x6f   :  { %487 = vadd.xlane.f32.xlu0 %v486_v13  ;;  %490 = vadd.xlane.f32.xlu1 %v489_v47  ;;  %v1720_v13 = vsel %vm223_vm13, 1.0, %v3452_v1  ;;  %v1869_v47 = vpack.c.bf16 %v879_v24, %v878_v39  ;;  %v163_v39 = vld [vmem:[#allocation2 + $0x1f8] sm:$0xff]  ;;  %v1722_v24 = vsel %vm227_vm15, 1.0, %v3452_v1  ;;  %3461 = vst [vmem:[#allocation33_spill] sm:$0xff] %v2606_v54  ;;  %v2608_v1 = vld [vmem:[#allocation2 + $0x1f0] sm:$0xff] }
  0x70   :  { %v2591_v34 = vadd.f32 %v1720_v13, %v159_v44  ;;  %v2602_v13 = vadd.f32 %v1721_v22, %v161_v30  ;;  %v2604_v8 = vadd.f32 %v1722_v24, %v163_v39  ;;  %3462 = vst [vmem:[#allocation34_spill] sm:$0xff] %v2608_v1  ;;  %v886_v22 = vld [vmem:[#allocation5 + $0x90] sm:$0xff]  ;;  %v887_v39 = vld [vmem:[#allocation5 + $0x98] sm:$0xff] }
  0x71   :  { %1870 = vmatpush1.bf16.msra.mxu0 %v1869_v47  ;;  %v1881_v24 = vpack.c.bf16 %v887_v39, %v886_v22  ;;  %v896_v39 = vld [vmem:[#allocation5 + $0xe0] sm:$0xff] }
  0x72   :  { %3457 = vst [vmem:[#allocation29_spill] sm:$0xff] %v2591_v34  ;;  %1871 = vmatprep.subr.bf16.mxu0 %v3447_v60  ;;  %v507_v44 = vadd.f32 %v2591_v34, %v2593_v9  ;;  %3459 = vst [vmem:[#allocation31_spill] sm:$0xff] %v2602_v13  ;;  %v1165_v34 = vld [vmem:[#allocation7 + $0x8] sm:$0xff] }
  0x73   :  { %493 = vadd.xlane.f32.xlu0 %v492_v15  ;;  %496 = vadd.xlane.f32.xlu1 %v495_v33  ;;  %v1872_v15 = vpack.c.bf16 %v881_v29, %v880_v7  ;;  %v882_v33 = vld [vmem:[#allocation5 + $0x70] sm:$0xff]  ;;  %3460 = vst [vmem:[#allocation32_spill] sm:$0xff] %v2604_v8  ;;  %v884_v7 = vld [vmem:[#allocation5 + $0x80] sm:$0xff]  ;;  %v885_v29 = vld [vmem:[#allocation5 + $0x88] sm:$0xff] }
  0x74   :  { %v1875_v47 = vpack.c.bf16 %v883_v46, %v882_v33  ;;  %v1878_v30 = vpack.c.bf16 %v885_v29, %v884_v7  ;;  %v889_v33 = vld [vmem:[#allocation5 + $0xa8] sm:$0xff]  ;;  %v892_v7 = vld [vmem:[#allocation5 + $0xc0] sm:$0xff] }
  0x75   :  { %1873 = vmatpush1.bf16.msra.mxu0 %v1872_v15  ;;  %v888_v15 = vld [vmem:[#allocation5 + $0xa0] sm:$0xff]  ;;  %v893_v29 = vld [vmem:[#allocation5 + $0xc8] sm:$0xff] }
  0x76   :  { %1874 = vmatprep.subr.bf16.mxu0 %v3447_v60  ;;  %v1884_v46 = vpack.c.bf16 %v889_v33, %v888_v15  ;;  %v898_v33 = vld [vmem:[#allocation5 + $0xf0] sm:$0xff] }
  0x77   :  { %499 = vadd.xlane.f32.xlu0 %v498_v4  ;;  %502 = vadd.xlane.f32.xlu1 %v501_v11  ;;  %v510_v4 = vadd.f32 %v2602_v13, %v2606_v54  ;;  %v513_v11 = vadd.f32 %v2604_v8, %v2608_v1  ;;  %v1164_v54 = vld [vmem:[#allocation7] sm:$0xff] }
  0x79   :  { %1876 = vmatpush1.bf16.msra.mxu0 %v1875_v47 }
  0x7a   :  { %1877 = vmatprep.subr.bf16.mxu0 %v3447_v60 }
  0x7b   :  { %505 = vadd.xlane.f32.xlu0 %v504_v2  ;;  %508 = vadd.xlane.f32.xlu1 %v507_v44  ;;  %v890_v2 = vld [vmem:[#allocation5 + $0xb0] sm:$0xff]  ;;  %v891_v44 = vld [vmem:[#allocation5 + $0xb8] sm:$0xff] }
  0x7c   :  { %v1887_v47 = vpack.c.bf16 %v891_v44, %v890_v2 }
  0x7d   :  { %1879 = vmatpush1.bf16.msra.mxu0 %v1878_v30  ;;  %v895_v30 = vld [vmem:[#allocation5 + $0xd8] sm:$0xff] }
  0x7e   :  { %1880 = vmatprep.subr.bf16.mxu0 %v3447_v60 }
  0x7f   :  { %511 = vadd.xlane.f32.xlu0 %v510_v4  ;;  %514 = vadd.xlane.f32.xlu1 %v513_v11  ;;  %v1890_v4 = vpack.c.bf16 %v893_v29, %v892_v7  ;;  %v894_v11 = vld [vmem:[#allocation5 + $0xd0] sm:$0xff] }
  0x80   :  { %v1893_v22 = vpack.c.bf16 %v895_v30, %v894_v11 }
  0x81   :  { %1882 = vmatpush1.bf16.msra.mxu0 %v1881_v24  ;;  %v897_v24 = vld [vmem:[#allocation5 + $0xe8] sm:$0xff] }
  0x82   :  { %1883 = vmatprep.subr.bf16.mxu0 %v3447_v60  ;;  %v1896_v15 = vpack.c.bf16 %v897_v24, %v896_v39 }
  0x85   :  { %1885 = vmatpush1.bf16.msra.mxu0 %v1884_v46  ;;  %v899_v46 = vld [vmem:[#allocation5 + $0xf8] sm:$0xff] }
  0x86   :  { %1886 = vmatprep.subr.bf16.mxu0 %v3447_v60  ;;  %v1899_v2 = vpack.c.bf16 %v899_v46, %v898_v33 }
  0x89   :  { %1888 = vmatpush1.bf16.msra.mxu0 %v1887_v47 }
  0x8a   :  { %1889 = vmatprep.subr.bf16.mxu0 %v3447_v60 }
  0x8d   :  { %1891 = vmatpush1.bf16.msra.mxu0 %v1890_v4 }
  0x8e   :  { %1892 = vmatprep.subr.bf16.mxu0 %v3447_v60 }
  0x91   :  { %1894 = vmatpush1.bf16.msra.mxu0 %v1893_v22 }
  0x92   :  { %1895 = vmatprep.subr.bf16.mxu0 %v3447_v60 }
  0x95   :  { %1897 = vmatpush1.bf16.msra.mxu0 %v1896_v15 }
  0x96   :  { %1898 = vmatprep.subr.bf16.mxu0 %v3447_v60 }
  0x99   :  { %1900 = vmatpush1.bf16.msra.mxu0 %v1899_v2 }
  0x9a   :  { %1933 = vmatprep.subr.bf16.mxu0 %v3447_v60 }
  0xd0   :  { %v428_v44 = vpop.xlane.xlu1 %427  ;;  %v422_v47 = vpop.xlane.xlu0 %421 }
  0xd1   :  { %vm518_vm0 = vcmp.gt.f32.partialorder %v428_v44, 0.0  ;;  %vm516_vm1 = vcmp.gt.f32.partialorder %v422_v47, 0.0 }
  0xd2   :  { %v550_v7 = vsel %vm518_vm0, %v428_v44, 1.0  ;;  %v548_v29 = vsel %vm516_vm1, %v422_v47, 1.0 }
  0xd3   :  { %2023 = vrcp.f32 %v550_v7 }
  0xd4   :  { %2025 = vrcp.f32 %v548_v29  ;;  %v431_v4 = vpop.xlane.xlu1 %430  ;;  %v425_v11 = vpop.xlane.xlu0 %424 }
  0xd5   :  { %vm519_vm2 = vcmp.gt.f32.partialorder %v431_v4, 0.0  ;;  %vm517_vm3 = vcmp.gt.f32.partialorder %v425_v11, 0.0 }
  0xd6   :  { %v551_v30 = vsel %vm519_vm2, %v431_v4, 1.0  ;;  %v549_v22 = vsel %vm517_vm3, %v425_v11, 1.0 }
  0xd7   :  { %2027 = vrcp.f32 %v551_v30 }
  0xd8   :  { %2029 = vrcp.f32 %v549_v22  ;;  %v2628_v39 = vpop.xlane.xlu1 %436  ;;  %v2630_v24 = vpop.xlane.xlu0 %433 }
  0xd9   :  { %vm521_vm4 = vcmp.gt.f32.partialorder %v2628_v39, 0.0  ;;  %vm520_vm5 = vcmp.gt.f32.partialorder %v2630_v24, 0.0 }
  0xda   :  { %v553_v15 = vsel %vm521_vm4, %v2628_v39, 1.0  ;;  %v552_v33 = vsel %vm520_vm5, %v2630_v24, 1.0 }
  0xdb   :  { %2031 = vrcp.f32 %v553_v15 }
  0xdc   :  { %2033 = vrcp.f32 %v552_v33  ;;  %v2640_v46 = vpop.xlane.xlu0 %439  ;;  %v2642_v2 = vpop.xlane.xlu1 %442 }
  0xdd   :  { %v2024_v7 = vpop.eup %2023  ;;  %vm522_vm6 = vcmp.gt.f32.partialorder %v2640_v46, 0.0  ;;  %vm523_vm7 = vcmp.gt.f32.partialorder %v2642_v2, 0.0 }
  0xde   :  { %v2026_v29 = vpop.eup %2025  ;;  %v646_v30 = vsel %vm518_vm0, %v2024_v7, 0.0  ;;  %v554_v22 = vsel %vm522_vm6, %v2640_v46, 1.0  ;;  %v555_v15 = vsel %vm523_vm7, %v2642_v2, 1.0 }
  0xdf   :  { %v2654_v33 = vmul.f32 %v646_v30, %v2320_v19  ;;  %v2657_v60 = vmul.f32 %v646_v30, %v2314_v14  ;;  %v644_v8 = vsel %vm516_vm1, %v2026_v29, 0.0  ;;  %2035 = vrcp.f32 %v554_v22  ;;  %v1166_v19 = vld [vmem:[#allocation7 + $0x10] sm:$0xff]  ;;  %v1168_v22 = vld [vmem:[#allocation7 + $0x20] sm:$0xff] }
  0xe0   :  { %v676_v44 = vmul.f32 %v644_v8, %v2324_v21  ;;  %v2662_v7 = vmul.f32 %v644_v8, %v2322_v20  ;;  %2037 = vrcp.f32 %v555_v15  ;;  %v2664_v1 = vpop.xlane.xlu0 %445  ;;  %v2666_v13 = vpop.xlane.xlu1 %448  ;;  %v1901_v14 = vpack.c.bf16 %v1165_v34, %v1164_v54  ;;  %v1167_v20 = vld [vmem:[#allocation7 + $0x18] sm:$0xff]  ;;  %v1169_v54 = vld [vmem:[#allocation7 + $0x28] sm:$0xff] }
  0xe1   :  { %v2028_v9 = vpop.eup %2027  ;;  %744 = vst [vmem:[#allocation8 + $0x20] sm:$0xff] %v2654_v33  ;;  %745 = vst [vmem:[#allocation8 + $0x28] sm:$0xff] %v2657_v60  ;;  %vm524_vm8 = vcmp.gt.f32.partialorder %v2664_v1, 0.0  ;;  %vm525_vm9 = vcmp.gt.f32.partialorder %v2666_v13, 0.0  ;;  %v1905_v30 = vpack.c.bf16 %v1167_v20, %v1166_v19 }
  0xe2   :  { %v2030_v21 = vpop.eup %2029  ;;  %740 = vst [vmem:[#allocation8] sm:$0xff] %v676_v44  ;;  %741 = vst [vmem:[#allocation8 + $0x8] sm:$0xff] %v2662_v7  ;;  %v647_v8 = vsel %vm519_vm2, %v2028_v9, 0.0  ;;  %v556_v47 = vsel %vm524_vm8, %v2664_v1, 1.0  ;;  %v557_v29 = vsel %vm525_vm9, %v2666_v13, 1.0  ;;  %971 = vmatprep.mubr.f32.mxu0 %v2662_v7  ;;  %1902 = vmatprep.subr.bf16.mxu1 %v1901_v14 }
  0xe3   :  { %v2682_v34 = vmul.f32 %v647_v8, %v2330_v25  ;;  %v683_v15 = vmul.f32 %v647_v8, %v2326_v23  ;;  %v645_v9 = vsel %vm517_vm3, %v2030_v21, 0.0  ;;  %2039 = vrcp.f32 %v556_v47  ;;  %972 = vmatmul.mubr.f32.vlgmr.msra.gmra.mrb[0].mxu0 %v676_v44  ;;  %1904 = vmatpush3.bf16.msra.mxu1 %v1901_v14  ;;  %v1170_v44 = vld [vmem:[#allocation7 + $0x30] sm:$0xff]  ;;  %v1171_v14 = vld [vmem:[#allocation7 + $0x38] sm:$0xff] }
  0xe4   :  { %v678_v4 = vmul.f32 %v645_v9, %v2340_v32  ;;  %v679_v45 = vmul.f32 %v645_v9, %v2332_v27  ;;  %2041 = vrcp.f32 %v557_v29  ;;  %v2688_v59 = vpop.xlane.xlu0 %451  ;;  %v2690_v19 = vpop.xlane.xlu1 %454  ;;  %1906 = vmatprep.subr.bf16.mxu1 %v1905_v30  ;;  %v1909_v23 = vpack.c.bf16 %v1169_v54, %v1168_v22  ;;  %v1172_v22 = vld [vmem:[#allocation7 + $0x40] sm:$0xff]  ;;  %v1173_v54 = vld [vmem:[#allocation7 + $0x48] sm:$0xff] }
  0xe5   :  { %v2032_v20 = vpop.eup %2031  ;;  %746 = vst [vmem:[#allocation8 + $0x30] sm:$0xff] %v2682_v34  ;;  %747 = vst [vmem:[#allocation8 + $0x38] sm:$0xff] %v683_v15  ;;  %vm526_vm10 = vcmp.gt.f32.partialorder %v2688_v59, 0.0  ;;  %vm527_vm11 = vcmp.gt.f32.partialorder %v2690_v19, 0.0 }
  0xe6   :  { %v2034_v25 = vpop.eup %2033  ;;  %742 = vst [vmem:[#allocation8 + $0x10] sm:$0xff] %v678_v4  ;;  %743 = vst [vmem:[#allocation8 + $0x18] sm:$0xff] %v679_v45  ;;  %v649_v27 = vsel %vm521_vm4, %v2032_v20, 0.0  ;;  %v558_v32 = vsel %vm526_vm10, %v2688_v59, 1.0  ;;  %976 = vmatprep.mubr.f32.mxu0 %v679_v45  ;;  %v559_v11 = vsel %vm527_vm11, %v2690_v19, 1.0 }
  0xe7   :  { %v2704_v21 = vmul.f32 %v649_v27, %v2345_v35  ;;  %v2707_v8 = vmul.f32 %v649_v27, %v2353_v41  ;;  %v648_v39 = vsel %vm520_vm5, %v2034_v25, 0.0  ;;  %2043 = vrcp.f32 %v558_v32  ;;  %977 = vmatmul.mubr.f32.gmra.mrb[2].mxu0 %v678_v4  ;;  %1908 = vmatpush3.bf16.msra.mxu1 %v1905_v30  ;;  %v1175_v32 = vld [vmem:[#allocation7 + $0x58] sm:$0xff] }
  0xe8   :  { %v2712_v47 = vmul.f32 %v648_v39, %v2349_v37  ;;  %v2715_v45 = vmul.f32 %v648_v39, %v2355_v42  ;;  %981 = vmatprep.mubr.f32.mxu0 %v2657_v60  ;;  %2045 = vrcp.f32 %v559_v11  ;;  %v2718_v29 = vpop.xlane.xlu0 %457  ;;  %v2720_v35 = vpop.xlane.xlu1 %460  ;;  %1910 = vmatprep.subr.bf16.mxu1 %v1909_v23  ;;  %v1913_v37 = vpack.c.bf16 %v1171_v14, %v1170_v44 }
  0xe9   :  { %v2036_v41 = vpop.eup %2035  ;;  %750 = vst [vmem:[#allocation8 + $0x50] sm:$0xff] %v2704_v21  ;;  %751 = vst [vmem:[#allocation8 + $0x58] sm:$0xff] %v2707_v8  ;;  %vm528_vm12 = vcmp.gt.f32.partialorder %v2718_v29, 0.0  ;;  %vm529_vm13 = vcmp.gt.f32.partialorder %v2720_v35, 0.0 }
  0xea   :  { %v2038_v42 = vpop.eup %2037  ;;  %748 = vst [vmem:[#allocation8 + $0x40] sm:$0xff] %v2712_v47  ;;  %749 = vst [vmem:[#allocation8 + $0x48] sm:$0xff] %v2715_v45  ;;  %v650_v60 = vsel %vm522_vm6, %v2036_v41, 0.0  ;;  %v560_v24 = vsel %vm528_vm12, %v2718_v29, 1.0  ;;  %v561_v30 = vsel %vm529_vm13, %v2720_v35, 1.0 }
  0xeb   :  { %v2737_v9 = vmul.f32 %v650_v60, %v2362_v48  ;;  %v2740_v4 = vmul.f32 %v650_v60, %v2369_v51  ;;  %v651_v46 = vsel %vm523_vm7, %v2038_v42, 0.0  ;;  %982 = vmatmul.mubr.f32.gmra.mrb[4].mxu0 %v2654_v33  ;;  %2047 = vrcp.f32 %v560_v24  ;;  %1912 = vmatpush3.bf16.msra.mxu1 %v1909_v23  ;;  %v1174_v23 = vld [vmem:[#allocation7 + $0x50] sm:$0xff] }
  0xec   :  { %v2746_v20 = vmul.f32 %v651_v46, %v2371_v52  ;;  %v2749_v25 = vmul.f32 %v651_v46, %v2373_v53  ;;  %986 = vmatprep.mubr.f32.mxu0 %v683_v15  ;;  %2049 = vrcp.f32 %v561_v30  ;;  %v2751_v27 = vpop.xlane.xlu0 %463  ;;  %v2753_v48 = vpop.xlane.xlu1 %466  ;;  %1914 = vmatprep.subr.bf16.mxu1 %v1913_v37  ;;  %v1917_v52 = vpack.c.bf16 %v1173_v54, %v1172_v22 }
  0xed   :  { %v2040_v51 = vpop.eup %2039  ;;  %752 = vst [vmem:[#allocation8 + $0x60] sm:$0xff] %v2737_v9  ;;  %753 = vst [vmem:[#allocation8 + $0x68] sm:$0xff] %v2740_v4  ;;  %vm530_vm14 = vcmp.gt.f32.partialorder %v2751_v27, 0.0  ;;  %vm531_vm15 = vcmp.gt.f32.partialorder %v2753_v48, 0.0 }
  0xee   :  { %v2042_v53 = vpop.eup %2041  ;;  %754 = vst [vmem:[#allocation8 + $0x70] sm:$0xff] %v2746_v20  ;;  %755 = vst [vmem:[#allocation8 + $0x78] sm:$0xff] %v2749_v25  ;;  %v652_v2 = vsel %vm524_vm8, %v2040_v51, 0.0  ;;  %v562_v33 = vsel %vm530_vm14, %v2751_v27, 1.0  ;;  %v563_v15 = vsel %vm531_vm15, %v2753_v48, 1.0 }
  0xef   :  { %v2770_v11 = vmul.f32 %v652_v2, %v2385_v62  ;;  %v2773_v44 = vmul.f32 %v652_v2, %v2390_v5  ;;  %v653_v1 = vsel %vm525_vm9, %v2042_v53, 0.0  ;;  %987 = vmatmul.mubr.f32.gmra.mrb[6].mxu0 %v2682_v34  ;;  %2051 = vrcp.f32 %v562_v33  ;;  %1916 = vmatpush3.bf16.msra.mxu1 %v1913_v37 }
  0xf0   :  { %v2779_v14 = vmul.f32 %v653_v1, %v2387_v63  ;;  %v2782_v39 = vmul.f32 %v653_v1, %v2392_v6  ;;  %991 = vmatprep.mubr.f32.mxu0 %v2715_v45  ;;  %2053 = vrcp.f32 %v563_v15  ;;  %v2785_v62 = vpop.xlane.xlu0 %469  ;;  %v2787_v41 = vpop.xlane.xlu1 %472  ;;  %1918 = vmatprep.subr.bf16.mxu1 %v1917_v52  ;;  %v1921_v63 = vpack.c.bf16 %v1175_v32, %v1174_v23 }
  0xf1   :  { %v2044_v5 = vpop.eup %2043  ;;  %756 = vst [vmem:[#allocation8 + $0x80] sm:$0xff] %v2770_v11  ;;  %757 = vst [vmem:[#allocation8 + $0x88] sm:$0xff] %v2773_v44  ;;  %vm532_vm0 = vcmp.gt.f32.partialorder %v2785_v62, 0.0  ;;  %vm533_vm1 = vcmp.gt.f32.partialorder %v2787_v41, 0.0 }
  0xf2   :  { %v2046_v6 = vpop.eup %2045  ;;  %758 = vst [vmem:[#allocation8 + $0x90] sm:$0xff] %v2779_v14  ;;  %759 = vst [vmem:[#allocation8 + $0x98] sm:$0xff] %v2782_v39  ;;  %v654_v13 = vsel %vm526_vm10, %v2044_v5, 0.0  ;;  %v564_v34 = vsel %vm532_vm0, %v2785_v62, 1.0  ;;  %v565_v37 = vsel %vm533_vm1, %v2787_v41, 1.0  ;;  %v3463_v62 = vld [vmem:[#allocation12_spill] sm:$0xff] }
  0xf3   :  { %v2804_v42 = vmul.f32 %v654_v13, %v2399_v12  ;;  %v2807_v60 = vmul.f32 %v654_v13, %v2405_v16  ;;  %v655_v24 = vsel %vm527_vm11, %v2046_v6, 0.0  ;;  %992 = vmatmul.mubr.f32.gmra.mrb[8].mxu0 %v2712_v47  ;;  %2055 = vrcp.f32 %v564_v34  ;;  %1920 = vmatpush3.bf16.msra.mxu1 %v1917_v52  ;;  %v3464_v6 = vld [vmem:[#allocation14_spill] sm:$0xff]  ;;  %v3465_v34 = vld [vmem:[#allocation13_spill] sm:$0xff] }
  0xf4   :  { %v2813_v59 = vmul.f32 %v655_v24, %v2407_v17  ;;  %v2816_v30 = vmul.f32 %v655_v24, %v2409_v18  ;;  %996 = vmatprep.mubr.f32.mxu0 %v2707_v8  ;;  %2057 = vrcp.f32 %v565_v37  ;;  %v2819_v12 = vpop.xlane.xlu0 %475  ;;  %v2821_v22 = vpop.xlane.xlu1 %478  ;;  %1922 = vmatprep.subr.bf16.mxu1 %v1921_v63 }
  0xf5   :  { %v2048_v16 = vpop.eup %2047  ;;  %760 = vst [vmem:[#allocation8 + $0xa0] sm:$0xff] %v2804_v42  ;;  %761 = vst [vmem:[#allocation8 + $0xa8] sm:$0xff] %v2807_v60  ;;  %vm534_vm2 = vcmp.gt.f32.partialorder %v2819_v12, 0.0  ;;  %vm535_vm3 = vcmp.gt.f32.partialorder %v2821_v22, 0.0 }
  0xf6   :  { %v2050_v17 = vpop.eup %2049  ;;  %762 = vst [vmem:[#allocation8 + $0xb0] sm:$0xff] %v2813_v59  ;;  %763 = vst [vmem:[#allocation8 + $0xb8] sm:$0xff] %v2816_v30  ;;  %v656_v18 = vsel %vm528_vm12, %v2048_v16, 0.0  ;;  %v566_v19 = vsel %vm534_vm2, %v2819_v12, 1.0  ;;  %v567_v8 = vsel %vm535_vm3, %v2821_v22, 1.0  ;;  %v3466_v12 = vld [vmem:[#allocation16_spill] sm:$0xff] }
  0xf7   :  { %v2838_v47 = vmul.f32 %v656_v18, %v2424_v36  ;;  %v2841_v54 = vmul.f32 %v656_v18, %v2429_v43  ;;  %v657_v46 = vsel %vm529_vm13, %v2050_v17, 0.0  ;;  %997 = vmatmul.mubr.f32.gmra.mrb[10].mxu0 %v2704_v21  ;;  %2059 = vrcp.f32 %v566_v19  ;;  %1924 = vmatpush3.bf16.msra.mxu1 %v1921_v63  ;;  %v3467_v17 = vld [vmem:[#allocation15_spill] sm:$0xff] }
  0xf8   :  { %v2847_v29 = vmul.f32 %v657_v46, %v2426_v38  ;;  %v2850_v51 = vmul.f32 %v657_v46, %v2431_v3  ;;  %1001 = vmatprep.mubr.f32.mxu0 %v2740_v4  ;;  %2061 = vrcp.f32 %v567_v8  ;;  %v2853_v36 = vpop.xlane.xlu0 %481  ;;  %v2855_v52 = vpop.xlane.xlu1 %484 }
  0xf9   :  { %v2052_v43 = vpop.eup %2051  ;;  %764 = vst [vmem:[#allocation8 + $0xc0] sm:$0xff] %v2838_v47  ;;  %765 = vst [vmem:[#allocation8 + $0xc8] sm:$0xff] %v2841_v54  ;;  %vm536_vm4 = vcmp.gt.f32.partialorder %v2853_v36, 0.0  ;;  %vm537_vm5 = vcmp.gt.f32.partialorder %v2855_v52, 0.0 }
  0xfa   :  { %v2054_v38 = vpop.eup %2053  ;;  %766 = vst [vmem:[#allocation8 + $0xd0] sm:$0xff] %v2847_v29  ;;  %767 = vst [vmem:[#allocation8 + $0xd8] sm:$0xff] %v2850_v51  ;;  %v658_v3 = vsel %vm530_vm14, %v2052_v43, 0.0  ;;  %v568_v21 = vsel %vm536_vm4, %v2853_v36, 1.0  ;;  %v569_v35 = vsel %vm537_vm5, %v2855_v52, 1.0 }
  0xfb   :  { %v2872_v4 = vmul.f32 %v658_v3, %v2438_v49  ;;  %v2875_v53 = vmul.f32 %v658_v3, %v2444_v55  ;;  %v659_v2 = vsel %vm531_vm15, %v2054_v38, 0.0  ;;  %1002 = vmatmul.mubr.f32.gmra.mrb[12].mxu0 %v2737_v9  ;;  %2063 = vrcp.f32 %v568_v21  ;;  %v3468_v38 = vld [vmem:[#allocation19_spill] sm:$0xff]  ;;  %v3469_v21 = vld [vmem:[#allocation17_spill] sm:$0xff] }
  0xfc   :  { %v2881_v27 = vmul.f32 %v659_v2, %v2446_v56  ;;  %v2884_v33 = vmul.f32 %v659_v2, %v2448_v57  ;;  %1006 = vmatprep.mubr.f32.mxu0 %v2749_v25  ;;  %2065 = vrcp.f32 %v569_v35  ;;  %v2887_v49 = vpop.xlane.xlu0 %487  ;;  %v2889_v15 = vpop.xlane.xlu1 %490  ;;  %v3470_v2 = vld [vmem:[#allocation20_spill] sm:$0xff] }
  0xfd   :  { %v2056_v55 = vpop.eup %2055  ;;  %768 = vst [vmem:[#allocation8 + $0xe0] sm:$0xff] %v2872_v4  ;;  %769 = vst [vmem:[#allocation8 + $0xe8] sm:$0xff] %v2875_v53  ;;  %vm538_vm6 = vcmp.gt.f32.partialorder %v2887_v49, 0.0  ;;  %vm539_vm7 = vcmp.gt.f32.partialorder %v2889_v15, 0.0 }
  0xfe   :  { %v2058_v56 = vpop.eup %2057  ;;  %770 = vst [vmem:[#allocation8 + $0xf0] sm:$0xff] %v2881_v27  ;;  %771 = vst [vmem:[#allocation8 + $0xf8] sm:$0xff] %v2884_v33  ;;  %v660_v57 = vsel %vm532_vm0, %v2056_v55, 0.0  ;;  %v570_v9 = vsel %vm538_vm6, %v2887_v49, 1.0  ;;  %v571_v25 = vsel %vm539_vm7, %v2889_v15, 1.0 }
  0xff   :  { %v2906_v48 = vmul.f32 %v660_v57, %v2465_v26  ;;  %v2909_v23 = vmul.f32 %v660_v57, %v2460_v10  ;;  %1007 = vmatmul.mubr.f32.gmra.mrb[14].mxu0 %v2746_v20  ;;  %v661_v32 = vsel %vm533_vm1, %v2058_v56, 0.0  ;;  %2067 = vrcp.f32 %v570_v9  ;;  %v3471_v56 = vld [vmem:[#allocation18_spill] sm:$0xff] }
 0x100   :  { %1011 = vmatprep.mubr.f32.mxu0 %v2773_v44  ;;  %v2916_v1 = vmul.f32 %v661_v32, %v2467_v28  ;;  %v2919_v5 = vmul.f32 %v661_v32, %v3463_v62  ;;  %2069 = vrcp.f32 %v571_v25  ;;  %v2921_v26 = vpop.xlane.xlu0 %493  ;;  %v2923_v63 = vpop.xlane.xlu1 %496 }
 0x101   :  { %v2060_v10 = vpop.eup %2059  ;;  %772 = vst [vmem:[#allocation8 + $0x100] sm:$0xff] %v2906_v48  ;;  %773 = vst [vmem:[#allocation8 + $0x108] sm:$0xff] %v2909_v23  ;;  %vm540_vm8 = vcmp.gt.f32.partialorder %v2921_v26, 0.0  ;;  %vm541_vm9 = vcmp.gt.f32.partialorder %v2923_v63, 0.0 }
 0x102   :  { %v2062_v20 = vpop.eup %2061  ;;  %774 = vst [vmem:[#allocation8 + $0x110] sm:$0xff] %v2916_v1  ;;  %775 = vst [vmem:[#allocation8 + $0x118] sm:$0xff] %v2919_v5  ;;  %v662_v28 = vsel %vm534_vm2, %v2060_v10, 0.0  ;;  %v572_v44 = vsel %vm540_vm8, %v2921_v26, 1.0  ;;  %v573_v41 = vsel %vm541_vm9, %v2923_v63, 1.0  ;;  %v3472_v10 = vld [vmem:[#allocation23_spill] sm:$0xff] }
 0x103   :  { %1012 = vmatmul.mubr.f32.gmra.mrb[16].mxu0 %v2770_v11  ;;  %v2941_v13 = vmul.f32 %v662_v28, %v3464_v6  ;;  %v2944_v37 = vmul.f32 %v662_v28, %v3465_v34  ;;  %v663_v24 = vsel %vm535_vm3, %v2062_v20, 0.0  ;;  %2071 = vrcp.f32 %v572_v44  ;;  %v3473_v28 = vld [vmem:[#allocation21_spill] sm:$0xff]  ;;  %v3475_v34 = vld [vmem:[#allocation22_spill] sm:$0xff] }
 0x104   :  { %1016 = vmatprep.mubr.f32.mxu0 %v2782_v39  ;;  %v2950_v16 = vmul.f32 %v663_v24, %v3466_v12  ;;  %v2953_v18 = vmul.f32 %v663_v24, %v3467_v17  ;;  %2073 = vrcp.f32 %v573_v41  ;;  %v2955_v11 = vpop.xlane.xlu0 %499  ;;  %v2957_v19 = vpop.xlane.xlu1 %502  ;;  %v3474_v41 = vld [vmem:[#allocation24_spill] sm:$0xff]  ;;  %v3476_v63 = vld [vmem:[#allocation26_spill] sm:$0xff] }
 0x105   :  { %v2064_v8 = vpop.eup %2063  ;;  %776 = vst [vmem:[#allocation8 + $0x120] sm:$0xff] %v2941_v13  ;;  %777 = vst [vmem:[#allocation8 + $0x128] sm:$0xff] %v2944_v37  ;;  %vm542_vm10 = vcmp.gt.f32.partialorder %v2955_v11, 0.0  ;;  %vm543_vm11 = vcmp.gt.f32.partialorder %v2957_v19, 0.0 }
 0x106   :  { %v2066_v39 = vpop.eup %2065  ;;  %778 = vst [vmem:[#allocation8 + $0x130] sm:$0xff] %v2950_v16  ;;  %779 = vst [vmem:[#allocation8 + $0x138] sm:$0xff] %v2953_v18  ;;  %v664_v22 = vsel %vm536_vm4, %v2064_v8, 0.0  ;;  %v574_v46 = vsel %vm542_vm10, %v2955_v11, 1.0  ;;  %v575_v43 = vsel %vm543_vm11, %v2957_v19, 1.0 }
 0x107   :  { %1017 = vmatmul.mubr.f32.gmra.mrb[18].mxu0 %v2779_v14  ;;  %v2975_v3 = vmul.f32 %v664_v22, %v3468_v38  ;;  %v2978_v35 = vmul.f32 %v664_v22, %v3469_v21  ;;  %v665_v36 = vsel %vm537_vm5, %v2066_v39, 0.0  ;;  %2075 = vrcp.f32 %v574_v46 }
 0x108   :  { %1021 = vmatprep.mubr.f32.mxu0 %v2807_v60  ;;  %v2984_v55 = vmul.f32 %v665_v36, %v3470_v2  ;;  %v2987_v57 = vmul.f32 %v665_v36, %v3471_v56  ;;  %2077 = vrcp.f32 %v575_v43  ;;  %v2989_v14 = vpop.xlane.xlu0 %505  ;;  %v2991_v9 = vpop.xlane.xlu1 %508  ;;  %v3477_v36 = vld [vmem:[#allocation25_spill] sm:$0xff]  ;;  %v3479_v56 = vld [vmem:[#allocation27_spill] sm:$0xff] }
 0x109   :  { %v2068_v25 = vpop.eup %2067  ;;  %780 = vst [vmem:[#allocation8 + $0x140] sm:$0xff] %v2975_v3  ;;  %781 = vst [vmem:[#allocation8 + $0x148] sm:$0xff] %v2978_v35  ;;  %vm544_vm12 = vcmp.gt.f32.partialorder %v2989_v14, 0.0  ;;  %vm545_vm13 = vcmp.gt.f32.partialorder %v2991_v9, 0.0 }
 0x10a   :  { %v2070_v60 = vpop.eup %2069  ;;  %782 = vst [vmem:[#allocation8 + $0x150] sm:$0xff] %v2984_v55  ;;  %783 = vst [vmem:[#allocation8 + $0x158] sm:$0xff] %v2987_v57  ;;  %v666_v52 = vsel %vm538_vm6, %v2068_v25, 0.0  ;;  %v576_v32 = vsel %vm544_vm12, %v2989_v14, 1.0  ;;  %v577_v62 = vsel %vm545_vm13, %v2991_v9, 1.0 }
 0x10b   :  { %1022 = vmatmul.mubr.f32.gmra.mrb[20].mxu0 %v2804_v42  ;;  %v3009_v20 = vmul.f32 %v666_v52, %v3472_v10  ;;  %v3012_v44 = vmul.f32 %v666_v52, %v3473_v28  ;;  %v667_v49 = vsel %vm539_vm7, %v2070_v60, 0.0  ;;  %2079 = vrcp.f32 %v576_v32  ;;  %v3480_v52 = vld [vmem:[#allocation30_spill] sm:$0xff]  ;;  %v3482_v28 = vld [vmem:[#allocation33_spill] sm:$0xff] }
 0x10c   :  { %1026 = vmatprep.mubr.f32.mxu0 %v2816_v30  ;;  %v3018_v6 = vmul.f32 %v667_v49, %v3474_v41  ;;  %v3021_v24 = vmul.f32 %v667_v49, %v3475_v34  ;;  %2081 = vrcp.f32 %v577_v62  ;;  %v512_v42 = vpop.xlane.xlu0 %511  ;;  %v515_v12 = vpop.xlane.xlu1 %514  ;;  %v3481_v62 = vld [vmem:[#allocation29_spill] sm:$0xff]  ;;  %v3483_v41 = vld [vmem:[#allocation31_spill] sm:$0xff] }
 0x10d   :  { %v2072_v17 = vpop.eup %2071  ;;  %784 = vst [vmem:[#allocation8 + $0x160] sm:$0xff] %v3009_v20  ;;  %785 = vst [vmem:[#allocation8 + $0x168] sm:$0xff] %v3012_v44  ;;  %vm546_vm14 = vcmp.gt.f32.partialorder %v512_v42, 0.0  ;;  %vm547_vm15 = vcmp.gt.f32.partialorder %v515_v12, 0.0 }
 0x10e   :  { %v2074_v15 = vpop.eup %2073  ;;  %786 = vst [vmem:[#allocation8 + $0x170] sm:$0xff] %v3018_v6  ;;  %787 = vst [vmem:[#allocation8 + $0x178] sm:$0xff] %v3021_v24  ;;  %v668_v30 = vsel %vm540_vm8, %v2072_v17, 0.0  ;;  %v578_v8 = vsel %vm546_vm14, %v512_v42, 1.0  ;;  %v579_v39 = vsel %vm547_vm15, %v515_v12, 1.0  ;;  %v1176_v42 = vld [vmem:[#allocation7 + $0x60] sm:$0xff] }
 0x10f   :  { %1027 = vmatmul.mubr.f32.gmra.mrb[22].mxu0 %v2813_v59  ;;  %v3033_v22 = vmul.f32 %v668_v30, %v2547_v61  ;;  %v3036_v46 = vmul.f32 %v668_v30, %v2541_v31  ;;  %v669_v43 = vsel %vm541_vm9, %v2074_v15, 0.0  ;;  %2083 = vrcp.f32 %v578_v8  ;;  %v3484_v15 = vld [vmem:[#allocation34_spill] sm:$0xff]  ;;  %v3485_v8 = vld [vmem:[#allocation32_spill] sm:$0xff]  ;;  %v1177_v12 = vld [vmem:[#allocation7 + $0x68] sm:$0xff] }
 0x110   :  { %1031 = vmatprep.mubr.f32.mxu0 %v2841_v54  ;;  %v3042_v26 = vmul.f32 %v669_v43, %v2551_v0  ;;  %v3045_v38 = vmul.f32 %v669_v43, %v2549_v58  ;;  %2085 = vrcp.f32 %v579_v39  ;;  %v1925_v43 = vpack.c.bf16 %v1177_v12, %v1176_v42 }
 0x111   :  { %v2076_v59 = vpop.eup %2075  ;;  %788 = vst [vmem:[#allocation8 + $0x180] sm:$0xff] %v3033_v22  ;;  %789 = vst [vmem:[#allocation8 + $0x188] sm:$0xff] %v3036_v46 }
 0x112   :  { %v2078_v31 = vpop.eup %2077  ;;  %790 = vst [vmem:[#allocation8 + $0x190] sm:$0xff] %v3042_v26  ;;  %791 = vst [vmem:[#allocation8 + $0x198] sm:$0xff] %v3045_v38  ;;  %v670_v61 = vsel %vm542_vm10, %v2076_v59, 0.0  ;;  %1926 = vmatprep.subr.bf16.mxu1 %v1925_v43  ;;  %v1178_v59 = vld [vmem:[#allocation7 + $0x70] sm:$0xff] }
 0x113   :  { %1032 = vmatmul.mubr.f32.gmra.mrb[24].mxu0 %v2838_v47  ;;  %v3055_v0 = vmul.f32 %v670_v61, %v2573_v50  ;;  %v3058_v58 = vmul.f32 %v670_v61, %v2566_v40  ;;  %v671_v54 = vsel %vm543_vm11, %v2078_v31, 0.0  ;;  %v3478_v47 = vld [vmem:[#allocation28_spill] sm:$0xff]  ;;  %1928 = vmatpush3.bf16.msra.mxu1 %v1925_v43  ;;  %v1179_v31 = vld [vmem:[#allocation7 + $0x78] sm:$0xff] }
 0x114   :  { %1036 = vmatprep.mubr.f32.mxu0 %v2850_v51  ;;  %v3064_v21 = vmul.f32 %v671_v54, %v3476_v63  ;;  %v3067_v2 = vmul.f32 %v671_v54, %v3477_v36  ;;  %v1929_v61 = vpack.c.bf16 %v1179_v31, %v1178_v59  ;;  %v3486_v54 = vmov 0.0|0.0   ;;  %v3153_v63 = vld [vmem:[%s3405_s2] ss:$0 sm:$0xff]  ;;  %s2215_s2 = smov [#allocation8]  }
 0x115   :  { %v2080_v11 = vpop.eup %2079  ;;  %792 = vst [vmem:[#allocation8 + $0x1a0] sm:$0xff] %v3055_v0  ;;  %793 = vst [vmem:[#allocation8 + $0x1a8] sm:$0xff] %v3058_v58  ;;  %s1676_s8 = sshll.u32 %s2215_s2, 4  ;;  %s1677_s8 = int_to_ptr.vmem [resolvable:$true] %s1676_s8 }
 0x116   :  { %v2082_v50 = vpop.eup %2081  ;;  %794 = vst [vmem:[#allocation8 + $0x1b0] sm:$0xff] %v3064_v21  ;;  %795 = vst [vmem:[#allocation8 + $0x1b8] sm:$0xff] %v3067_v2  ;;  %v672_v40 = vsel %vm544_vm12, %v2080_v11, 0.0  ;;  %1930 = vmatprep.subr.bf16.mxu1 %v1929_v61  ;;  %s2178_s13 = scalar_lea.vmem %s1677_s8, 8192  ;;  %p2183_p11 = scmp.lt.s32.totalorder %s1677_s8, %s1677_s8 }
 0x117   :  { %1037 = vmatmul.mubr.f32.gmra.mrb[26].mxu0 %v2847_v29  ;;  %v3077_v19 = vmul.f32 %v672_v40, %v3478_v47  ;;  %v3080_v25 = vmul.f32 %v672_v40, %v3479_v56  ;;  %v673_v60 = vsel %vm545_vm13, %v2082_v50, 0.0  ;;  %1932 = vmatpush3.bf16.msra.mxu1 %v1929_v61  ;;  %p2179_p10 = scmp.ne.s32.totalorder %s1677_s8, %s2178_s13  ;;  %p2184_p12 = scmp.lt.s32.totalorder %s2178_s13, %s2178_s13 }
 0x118   :  { %1041 = vmatprep.mubr.f32.mxu0 %v2875_v53  ;;  %v3086_v32 = vmul.f32 %v673_v60, %v3480_v52  ;;  %v3089_v10 = vmul.f32 %v673_v60, %v3481_v62  ;;  %1981 = vmatprep.subr.bf16.mxu1 %v3486_v54 }
 0x119   :  { %v2084_v14 = vpop.eup %2083  ;;  %796 = vst [vmem:[#allocation8 + $0x1c0] sm:$0xff] %v3077_v19  ;;  %797 = vst [vmem:[#allocation8 + $0x1c8] sm:$0xff] %v3080_v25  ;;  %p2185_p13 = por %p2184_p12, %p2183_p11 }
 0x11a   :  { %v2086_v29 = vpop.eup %2085  ;;  %798 = vst [vmem:[#allocation8 + $0x1d0] sm:$0xff] %v3086_v32  ;;  %799 = vst [vmem:[#allocation8 + $0x1d8] sm:$0xff] %v3089_v10  ;;  %v674_v9 = vsel %vm546_vm14, %v2084_v14, 0.0 }
 0x11b   :  { %1042 = vmatmul.mubr.f32.gmra.mrb[28].mxu0 %v2872_v4  ;;  %v3098_v49 = vmul.f32 %v674_v9, %v3482_v28  ;;  %v3101_v34 = vmul.f32 %v674_v9, %v3483_v41  ;;  %v675_v17 = vsel %vm547_vm15, %v2086_v29, 0.0  ;;  %p2186_p0 = pnand %p2185_p13, %p2179_p10 }
 0x11c   :  { %1046 = vmatprep.mubr.f32.mxu0 %v2884_v33  ;;  %v3106_v30 = vmul.f32 %v675_v17, %v3484_v15  ;;  %v3109_v39 = vmul.f32 %v675_v17, %v3485_v8 }
 0x11d   :  { %800 = vst [vmem:[#allocation8 + $0x1e0] sm:$0xff] %v3098_v49  ;;  %801 = vst [vmem:[#allocation8 + $0x1e8] sm:$0xff] %v3101_v34 }
 0x11e   :  { %802 = vst [vmem:[#allocation8 + $0x1f0] sm:$0xff] %v3106_v30  ;;  %803 = vst [vmem:[#allocation8 + $0x1f8] sm:$0xff] %v3109_v39 }
 0x11f   :  { %1047 = vmatmul.mubr.f32.gmra.mrb[30].mxu0 %v2881_v27 }
 0x120   :  { %1051 = vmatprep.mubr.f32.mxu0 %v2909_v23 }
 0x123   :  { %1052 = vmatmul.mubr.f32.gmra.mrb[32].mxu0 %v2906_v48 }
 0x124   :  { %1056 = vmatprep.mubr.f32.mxu0 %v2919_v5 }
 0x127   :  { %1057 = vmatmul.mubr.f32.gmra.mrb[34].mxu0 %v2916_v1 }
 0x128   :  { %1061 = vmatprep.mubr.f32.mxu0 %v2944_v37 }
 0x12b   :  { %1062 = vmatmul.mubr.f32.gmra.mrb[36].mxu0 %v2941_v13 }
 0x12c   :  { %1066 = vmatprep.mubr.f32.mxu0 %v2953_v18 }
 0x12f   :  { %1067 = vmatmul.mubr.f32.gmra.mrb[38].mxu0 %v2950_v16 }
 0x130   :  { %1071 = vmatprep.mubr.f32.mxu0 %v2978_v35 }
 0x133   :  { %1072 = vmatmul.mubr.f32.gmra.mrb[40].mxu0 %v2975_v3 }
 0x134   :  { %1076 = vmatprep.mubr.f32.mxu0 %v2987_v57 }
 0x137   :  { %1077 = vmatmul.mubr.f32.gmra.mrb[42].mxu0 %v2984_v55 }
 0x138   :  { %1081 = vmatprep.mubr.f32.mxu0 %v3012_v44 }
 0x13b   :  { %1082 = vmatmul.mubr.f32.gmra.mrb[44].mxu0 %v3009_v20 }
 0x13c   :  { %1086 = vmatprep.mubr.f32.mxu0 %v3021_v24 }
 0x13f   :  { %1087 = vmatmul.mubr.f32.gmra.mrb[46].mxu0 %v3018_v6 }
 0x140   :  { %1091 = vmatprep.mubr.f32.mxu0 %v3036_v46 }
 0x143   :  { %1092 = vmatmul.mubr.f32.gmra.mrb[48].mxu0 %v3033_v22 }
 0x144   :  { %1096 = vmatprep.mubr.f32.mxu0 %v3045_v38 }
 0x147   :  { %1097 = vmatmul.mubr.f32.gmra.mrb[50].mxu0 %v3042_v26 }
 0x148   :  { %1101 = vmatprep.mubr.f32.mxu0 %v3058_v58 }
 0x14b   :  { %1102 = vmatmul.mubr.f32.gmra.mrb[52].mxu0 %v3055_v0 }
 0x14c   :  { %1106 = vmatprep.mubr.f32.mxu0 %v3067_v2 }
 0x14f   :  { %1107 = vmatmul.mubr.f32.gmra.mrb[54].mxu0 %v3064_v21 }
 0x150   :  { %1111 = vmatprep.mubr.f32.mxu0 %v3080_v25 }
 0x153   :  { %1112 = vmatmul.mubr.f32.gmra.mrb[56].mxu0 %v3077_v19 }
 0x154   :  { %1116 = vmatprep.mubr.f32.mxu0 %v3089_v10 }
 0x157   :  { %1117 = vmatmul.mubr.f32.gmra.mrb[58].mxu0 %v3086_v32 }
 0x158   :  { %1121 = vmatprep.mubr.f32.mxu0 %v3101_v34 }
 0x15b   :  { %1122 = vmatmul.mubr.f32.gmra.mrb[60].mxu0 %v3098_v49 }
 0x15c   :  { %1126 = vmatprep.mubr.f32.mxu0 %v3109_v39 }
 0x15f   :  { %1127 = vmatmul.mubr.f32.gmra.mrb[62].mxu0 %v3106_v30 }
 0x160   :  { %1476 = vmatprep.mubr.f32.mxu0 %v2662_v7 }
 0x1b6   :  { %v973_v36 = vpop.f32.mrb[0].mxu0 }
 0x1b7   :  { %v975_v11 = vpop.f32.mrb[1].mxu0  ;;  %v974_v50 = vadd.f32 %v3153_v63, %v973_v36 }
 0x1b9   :  { %v1132_v40 = vmax.f32 %v974_v50, 0.0 }
 0x1ba   :  { %v978_v47 = vpop.f32.mrb[2].mxu0 }
 0x1bb   :  { %v979_v56 = vadd.f32 %v3153_v63, %v978_v47  ;;  %v980_v60 = vpop.f32.mrb[3].mxu0  ;;  %1805 = vmatprep.mubr.f32.mxu1 %v1132_v40 }
 0x1bd   :  { %v1133_v52 = vmax.f32 %v979_v56, 0.0 }
 0x1be   :  { %v983_v62 = vpop.f32.mrb[4].mxu0 }
 0x1bf   :  { %v984_v14 = vadd.f32 %v3153_v63, %v983_v62  ;;  %v985_v7 = vpop.f32.mrb[5].mxu0  ;;  %1806 = vmatmul.mubr.f32.vlgmr.msra.gmra.mrb[0].mxu1 %v1133_v52 }
 0x1c1   :  { %v1134_v29 = vmax.f32 %v984_v14, 0.0 }
 0x1c2   :  { %v988_v9 = vpop.f32.mrb[6].mxu0 }
 0x1c3   :  { %v989_v28 = vadd.f32 %v3153_v63, %v988_v9  ;;  %v990_v41 = vpop.f32.mrb[7].mxu0  ;;  %1808 = vmatprep.mubr.f32.mxu1 %v1134_v29 }
 0x1c5   :  { %v1135_v17 = vmax.f32 %v989_v28, 0.0 }
 0x1c6   :  { %v993_v15 = vpop.f32.mrb[8].mxu0 }
 0x1c7   :  { %v994_v8 = vadd.f32 %v3153_v63, %v993_v15  ;;  %v995_v42 = vpop.f32.mrb[9].mxu0  ;;  %1809 = vmatmul.mubr.f32.gmra.mrb[2].mxu1 %v1135_v17 }
 0x1c9   :  { %v1136_v12 = vmax.f32 %v994_v8, 0.0 }
 0x1ca   :  { %v998_v43 = vpop.f32.mrb[10].mxu0 }
 0x1cb   :  { %v999_v59 = vadd.f32 %v3153_v63, %v998_v43  ;;  %v1000_v31 = vpop.f32.mrb[11].mxu0  ;;  %1811 = vmatprep.mubr.f32.mxu1 %v1136_v12 }
 0x1cd   :  { %v1137_v61 = vmax.f32 %v999_v59, 0.0 }
 0x1ce   :  { %v1003_v36 = vpop.f32.mrb[12].mxu0 }
 0x1cf   :  { %v1004_v11 = vadd.f32 %v3153_v63, %v1003_v36  ;;  %v1005_v50 = vpop.f32.mrb[13].mxu0  ;;  %1812 = vmatmul.mubr.f32.gmra.mrb[4].mxu1 %v1137_v61 }
 0x1d1   :  { %v1138_v40 = vmax.f32 %v1004_v11, 0.0 }
 0x1d2   :  { %v1008_v47 = vpop.f32.mrb[14].mxu0 }
 0x1d3   :  { %v1009_v56 = vadd.f32 %v3153_v63, %v1008_v47  ;;  %v1010_v60 = vpop.f32.mrb[15].mxu0  ;;  %1814 = vmatprep.mubr.f32.mxu1 %v1138_v40 }
 0x1d5   :  { %v1139_v52 = vmax.f32 %v1009_v56, 0.0 }
 0x1d6   :  { %v1013_v62 = vpop.f32.mrb[16].mxu0 }
 0x1d7   :  { %v1014_v14 = vadd.f32 %v3153_v63, %v1013_v62  ;;  %v1015_v7 = vpop.f32.mrb[17].mxu0  ;;  %1815 = vmatmul.mubr.f32.gmra.mrb[6].mxu1 %v1139_v52 }
 0x1d9   :  { %v1140_v29 = vmax.f32 %v1014_v14, 0.0 }
 0x1da   :  { %v1018_v9 = vpop.f32.mrb[18].mxu0 }
 0x1db   :  { %v1019_v28 = vadd.f32 %v3153_v63, %v1018_v9  ;;  %v1020_v41 = vpop.f32.mrb[19].mxu0  ;;  %1817 = vmatprep.mubr.f32.mxu1 %v1140_v29 }
 0x1dd   :  { %v1141_v17 = vmax.f32 %v1019_v28, 0.0 }
 0x1de   :  { %v1023_v15 = vpop.f32.mrb[20].mxu0 }
 0x1df   :  { %v1024_v8 = vadd.f32 %v3153_v63, %v1023_v15  ;;  %v1025_v42 = vpop.f32.mrb[21].mxu0  ;;  %1818 = vmatmul.mubr.f32.gmra.mrb[8].mxu1 %v1141_v17 }
 0x1e1   :  { %v1142_v12 = vmax.f32 %v1024_v8, 0.0 }
 0x1e2   :  { %v1028_v43 = vpop.f32.mrb[22].mxu0 }
 0x1e3   :  { %v1029_v59 = vadd.f32 %v3153_v63, %v1028_v43  ;;  %v1030_v31 = vpop.f32.mrb[23].mxu0  ;;  %1820 = vmatprep.mubr.f32.mxu1 %v1142_v12 }
 0x1e5   :  { %v1143_v61 = vmax.f32 %v1029_v59, 0.0 }
 0x1e6   :  { %v1033_v36 = vpop.f32.mrb[24].mxu0 }
 0x1e7   :  { %v1034_v11 = vadd.f32 %v3153_v63, %v1033_v36  ;;  %v1035_v50 = vpop.f32.mrb[25].mxu0  ;;  %1821 = vmatmul.mubr.f32.gmra.mrb[10].mxu1 %v1143_v61 }
 0x1e9   :  { %v1144_v40 = vmax.f32 %v1034_v11, 0.0 }
 0x1ea   :  { %v1038_v47 = vpop.f32.mrb[26].mxu0 }
 0x1eb   :  { %v1039_v56 = vadd.f32 %v3153_v63, %v1038_v47  ;;  %v1040_v60 = vpop.f32.mrb[27].mxu0  ;;  %1823 = vmatprep.mubr.f32.mxu1 %v1144_v40 }
 0x1ed   :  { %v1145_v52 = vmax.f32 %v1039_v56, 0.0 }
 0x1ee   :  { %v1043_v62 = vpop.f32.mrb[28].mxu0 }
 0x1ef   :  { %v1044_v14 = vadd.f32 %v3153_v63, %v1043_v62  ;;  %v1045_v7 = vpop.f32.mrb[29].mxu0  ;;  %1824 = vmatmul.mubr.f32.gmra.mrb[12].mxu1 %v1145_v52 }
 0x1f1   :  { %v1146_v29 = vmax.f32 %v1044_v14, 0.0 }
 0x1f2   :  { %v1048_v9 = vpop.f32.mrb[30].mxu0 }
 0x1f3   :  { %v1049_v28 = vadd.f32 %v3153_v63, %v1048_v9  ;;  %v1050_v41 = vpop.f32.mrb[31].mxu0  ;;  %1826 = vmatprep.mubr.f32.mxu1 %v1146_v29 }
 0x1f5   :  { %v1147_v17 = vmax.f32 %v1049_v28, 0.0 }
 0x1f6   :  { %v1053_v15 = vpop.f32.mrb[32].mxu0 }
 0x1f7   :  { %v1054_v8 = vadd.f32 %v3153_v63, %v1053_v15  ;;  %v1055_v42 = vpop.f32.mrb[33].mxu0  ;;  %1827 = vmatmul.mubr.f32.gmra.mrb[14].mxu1 %v1147_v17 }
 0x1f9   :  { %v1148_v12 = vmax.f32 %v1054_v8, 0.0 }
 0x1fa   :  { %v1058_v43 = vpop.f32.mrb[34].mxu0 }
 0x1fb   :  { %v1059_v59 = vadd.f32 %v3153_v63, %v1058_v43  ;;  %v1060_v31 = vpop.f32.mrb[35].mxu0  ;;  %1829 = vmatprep.mubr.f32.mxu1 %v1148_v12 }
 0x1fd   :  { %v1149_v61 = vmax.f32 %v1059_v59, 0.0 }
 0x1fe   :  { %v1063_v36 = vpop.f32.mrb[36].mxu0 }
 0x1ff   :  { %v1064_v11 = vadd.f32 %v3153_v63, %v1063_v36  ;;  %v1065_v50 = vpop.f32.mrb[37].mxu0  ;;  %1830 = vmatmul.mubr.f32.gmra.mrb[16].mxu1 %v1149_v61 }
 0x201   :  { %v1150_v40 = vmax.f32 %v1064_v11, 0.0 }
 0x202   :  { %v1068_v47 = vpop.f32.mrb[38].mxu0 }
 0x203   :  { %v1069_v56 = vadd.f32 %v3153_v63, %v1068_v47  ;;  %v1070_v60 = vpop.f32.mrb[39].mxu0  ;;  %1832 = vmatprep.mubr.f32.mxu1 %v1150_v40 }
 0x205   :  { %v1151_v52 = vmax.f32 %v1069_v56, 0.0 }
 0x206   :  { %v1073_v62 = vpop.f32.mrb[40].mxu0 }
 0x207   :  { %v1074_v14 = vadd.f32 %v3153_v63, %v1073_v62  ;;  %v1075_v7 = vpop.f32.mrb[41].mxu0  ;;  %1833 = vmatmul.mubr.f32.gmra.mrb[18].mxu1 %v1151_v52 }
 0x209   :  { %v1152_v29 = vmax.f32 %v1074_v14, 0.0 }
 0x20a   :  { %v1078_v9 = vpop.f32.mrb[42].mxu0 }
 0x20b   :  { %v1079_v28 = vadd.f32 %v3153_v63, %v1078_v9  ;;  %v1080_v41 = vpop.f32.mrb[43].mxu0  ;;  %1835 = vmatprep.mubr.f32.mxu1 %v1152_v29 }
 0x20d   :  { %v1153_v17 = vmax.f32 %v1079_v28, 0.0 }
 0x20e   :  { %v1083_v15 = vpop.f32.mrb[44].mxu0 }
 0x20f   :  { %v1084_v8 = vadd.f32 %v3153_v63, %v1083_v15  ;;  %v1085_v42 = vpop.f32.mrb[45].mxu0  ;;  %1836 = vmatmul.mubr.f32.gmra.mrb[20].mxu1 %v1153_v17 }
 0x211   :  { %v1154_v12 = vmax.f32 %v1084_v8, 0.0 }
 0x212   :  { %v1088_v43 = vpop.f32.mrb[46].mxu0 }
 0x213   :  { %v1089_v59 = vadd.f32 %v3153_v63, %v1088_v43  ;;  %v1090_v31 = vpop.f32.mrb[47].mxu0  ;;  %1838 = vmatprep.mubr.f32.mxu1 %v1154_v12 }
 0x215   :  { %v1155_v61 = vmax.f32 %v1089_v59, 0.0 }
 0x216   :  { %v1093_v36 = vpop.f32.mrb[48].mxu0 }
 0x217   :  { %v1094_v11 = vadd.f32 %v3153_v63, %v1093_v36  ;;  %v1095_v50 = vpop.f32.mrb[49].mxu0  ;;  %1839 = vmatmul.mubr.f32.gmra.mrb[22].mxu1 %v1155_v61 }
 0x219   :  { %v1156_v40 = vmax.f32 %v1094_v11, 0.0 }
 0x21a   :  { %v1098_v47 = vpop.f32.mrb[50].mxu0 }
 0x21b   :  { %v1099_v56 = vadd.f32 %v3153_v63, %v1098_v47  ;;  %v1100_v60 = vpop.f32.mrb[51].mxu0  ;;  %1841 = vmatprep.mubr.f32.mxu1 %v1156_v40 }
 0x21d   :  { %v1157_v52 = vmax.f32 %v1099_v56, 0.0 }
 0x21e   :  { %v1103_v62 = vpop.f32.mrb[52].mxu0 }
 0x21f   :  { %v1104_v14 = vadd.f32 %v3153_v63, %v1103_v62  ;;  %v1105_v7 = vpop.f32.mrb[53].mxu0  ;;  %1842 = vmatmul.mubr.f32.gmra.mrb[24].mxu1 %v1157_v52 }
 0x221   :  { %v1158_v29 = vmax.f32 %v1104_v14, 0.0 }
 0x222   :  { %v1108_v9 = vpop.f32.mrb[54].mxu0 }
 0x223   :  { %v1109_v28 = vadd.f32 %v3153_v63, %v1108_v9  ;;  %v1110_v41 = vpop.f32.mrb[55].mxu0  ;;  %1844 = vmatprep.mubr.f32.mxu1 %v1158_v29 }
 0x225   :  { %v1159_v17 = vmax.f32 %v1109_v28, 0.0 }
 0x226   :  { %v1113_v15 = vpop.f32.mrb[56].mxu0 }
 0x227   :  { %v1114_v8 = vadd.f32 %v3153_v63, %v1113_v15  ;;  %v1115_v42 = vpop.f32.mrb[57].mxu0  ;;  %1845 = vmatmul.mubr.f32.gmra.mrb[26].mxu1 %v1159_v17 }
 0x229   :  { %v1160_v12 = vmax.f32 %v1114_v8, 0.0 }
 0x22a   :  { %v1118_v43 = vpop.f32.mrb[58].mxu0 }
 0x22b   :  { %v1119_v59 = vadd.f32 %v3153_v63, %v1118_v43  ;;  %v1120_v31 = vpop.f32.mrb[59].mxu0  ;;  %1847 = vmatprep.mubr.f32.mxu1 %v1160_v12 }
 0x22d   :  { %v1161_v61 = vmax.f32 %v1119_v59, 0.0 }
 0x22e   :  { %v1123_v36 = vpop.f32.mrb[60].mxu0 }
 0x22f   :  { %v1124_v11 = vadd.f32 %v3153_v63, %v1123_v36  ;;  %v1125_v50 = vpop.f32.mrb[61].mxu0  ;;  %1848 = vmatmul.mubr.f32.gmra.mrb[28].mxu1 %v1161_v61 }
 0x231   :  { %v1162_v40 = vmax.f32 %v1124_v11, 0.0 }
 0x232   :  { %v1128_v47 = vpop.f32.mrb[62].mxu0 }
 0x233   :  { %v1129_v56 = vadd.f32 %v3153_v63, %v1128_v47  ;;  %v1130_v60 = vpop.f32.mrb[63].mxu0  ;;  %1850 = vmatprep.mubr.f32.mxu1 %v1162_v40 }
 0x235   :  { %v1163_v52 = vmax.f32 %v1129_v56, 0.0 }
 0x237   :  { %1851 = vmatmul.mubr.f32.gmra.mrb[30].mxu1 %v1163_v52 }
 0x238   :  { %1496 = vmatprep.mubr.f32.mxu1 %v2715_v45 }
 0x292   :  { %v1807_v62 = vpop.f32.mrb[0].mxu1 }
 0x293   :  { %v1246_v14 = vpop.f32.mrb[1].mxu1 }
 0x294   :  { %v1934_v7 = vpack.c.bf16 %v1807_v62, %v1246_v14 }
 0x296   :  { %1935 = vmatpush1.bf16.msra.mxu0 %v1934_v7  ;;  %1997 = vmatpush1.bf16.msra.mxu1 %v1934_v7 }
 0x297   :  { %1936 = vmatprep.subr.bf16.mxu0 %v3486_v54  ;;  %1982 = vmatprep.subr.bf16.mxu1 %v3486_v54 }
 0x29a   :  { %v1810_v29 = vpop.f32.mrb[2].mxu1 }
 0x29b   :  { %v1256_v9 = vpop.f32.mrb[3].mxu1 }
 0x29c   :  { %v1937_v28 = vpack.c.bf16 %v1810_v29, %v1256_v9 }
 0x29e   :  { %1938 = vmatpush1.bf16.msra.mxu0 %v1937_v28  ;;  %1998 = vmatpush1.bf16.msra.mxu1 %v1937_v28 }
 0x29f   :  { %1939 = vmatprep.subr.bf16.mxu0 %v3486_v54  ;;  %1983 = vmatprep.subr.bf16.mxu1 %v3486_v54 }
 0x2a2   :  { %v1813_v63 = vpop.f32.mrb[4].mxu1 }
 0x2a3   :  { %v1266_v45 = vpop.f32.mrb[5].mxu1 }
 0x2a4   :  { %v1940_v41 = vpack.c.bf16 %v1813_v63, %v1266_v45 }
 0x2a6   :  { %1941 = vmatpush1.bf16.msra.mxu0 %v1940_v41  ;;  %1999 = vmatpush1.bf16.msra.mxu1 %v1940_v41 }
 0x2a7   :  { %1942 = vmatprep.subr.bf16.mxu0 %v3486_v54  ;;  %1984 = vmatprep.subr.bf16.mxu1 %v3486_v54 }
 0x2aa   :  { %v1816_v17 = vpop.f32.mrb[6].mxu1 }
 0x2ab   :  { %v1276_v15 = vpop.f32.mrb[7].mxu1 }
 0x2ac   :  { %v1943_v8 = vpack.c.bf16 %v1816_v17, %v1276_v15 }
 0x2ae   :  { %1944 = vmatpush1.bf16.msra.mxu0 %v1943_v8  ;;  %2000 = vmatpush1.bf16.msra.mxu1 %v1943_v8 }
 0x2af   :  { %1945 = vmatprep.subr.bf16.mxu0 %v3486_v54  ;;  %1985 = vmatprep.subr.bf16.mxu1 %v3486_v54 }
 0x2b2   :  { %v1819_v42 = vpop.f32.mrb[8].mxu1 }
 0x2b3   :  { %v1286_v12 = vpop.f32.mrb[9].mxu1 }
 0x2b4   :  { %v1946_v43 = vpack.c.bf16 %v1819_v42, %v1286_v12 }
 0x2b6   :  { %1947 = vmatpush1.bf16.msra.mxu0 %v1946_v43  ;;  %2001 = vmatpush1.bf16.msra.mxu1 %v1946_v43 }
 0x2b7   :  { %1948 = vmatprep.subr.bf16.mxu0 %v3486_v54  ;;  %1986 = vmatprep.subr.bf16.mxu1 %v3486_v54 }
 0x2ba   :  { %v1822_v59 = vpop.f32.mrb[10].mxu1 }
 0x2bb   :  { %v1296_v31 = vpop.f32.mrb[11].mxu1 }
 0x2bc   :  { %v1949_v61 = vpack.c.bf16 %v1822_v59, %v1296_v31 }
 0x2be   :  { %1950 = vmatpush1.bf16.msra.mxu0 %v1949_v61  ;;  %2002 = vmatpush1.bf16.msra.mxu1 %v1949_v61 }
 0x2bf   :  { %1951 = vmatprep.subr.bf16.mxu0 %v3486_v54  ;;  %1987 = vmatprep.subr.bf16.mxu1 %v3486_v54 }
 0x2c2   :  { %v1825_v36 = vpop.f32.mrb[12].mxu1 }
 0x2c3   :  { %v1306_v11 = vpop.f32.mrb[13].mxu1 }
 0x2c4   :  { %v1952_v50 = vpack.c.bf16 %v1825_v36, %v1306_v11 }
 0x2c6   :  { %1953 = vmatpush1.bf16.msra.mxu0 %v1952_v50  ;;  %2003 = vmatpush1.bf16.msra.mxu1 %v1952_v50 }
 0x2c7   :  { %1954 = vmatprep.subr.bf16.mxu0 %v3486_v54  ;;  %1988 = vmatprep.subr.bf16.mxu1 %v3486_v54 }
 0x2ca   :  { %v1828_v40 = vpop.f32.mrb[14].mxu1 }
 0x2cb   :  { %v1316_v47 = vpop.f32.mrb[15].mxu1 }
 0x2cc   :  { %v1955_v56 = vpack.c.bf16 %v1828_v40, %v1316_v47  ;;  %v2087_v47 = vld [vmem:[#allocation8] sm:$0xff] }
 0x2ce   :  { %1956 = vmatpush1.bf16.msra.mxu0 %v1955_v56  ;;  %2004 = vmatpush1.bf16.msra.mxu1 %v1955_v56  ;;  %v2088_v56 = vld [vmem:[#allocation8 + $0x40] sm:$0xff] }
 0x2cf   :  { %1957 = vmatprep.subr.bf16.mxu0 %v3486_v54  ;;  %1989 = vmatprep.subr.bf16.mxu1 %v3486_v54 }
 0x2d2   :  { %v1831_v60 = vpop.f32.mrb[16].mxu1 }
 0x2d3   :  { %v1326_v52 = vpop.f32.mrb[17].mxu1 }
 0x2d4   :  { %v1958_v62 = vpack.c.bf16 %v1831_v60, %v1326_v52  ;;  %v2089_v60 = vld [vmem:[#allocation8 + $0x18] sm:$0xff] }
 0x2d5   :  { %v2090_v52 = vld [vmem:[#allocation8 + $0x58] sm:$0xff] }
 0x2d6   :  { %1959 = vmatpush1.bf16.msra.mxu0 %v1958_v62  ;;  %2005 = vmatpush1.bf16.msra.mxu1 %v1958_v62  ;;  %v2091_v62 = vld [vmem:[#allocation8 + $0x10] sm:$0xff] }
 0x2d7   :  { %1960 = vmatprep.subr.bf16.mxu0 %v3486_v54  ;;  %1990 = vmatprep.subr.bf16.mxu1 %v3486_v54 }
 0x2da   :  { %v1834_v14 = vpop.f32.mrb[18].mxu1 }
 0x2db   :  { %v1336_v7 = vpop.f32.mrb[19].mxu1 }
 0x2dc   :  { %v1961_v29 = vpack.c.bf16 %v1834_v14, %v1336_v7  ;;  %v2092_v14 = vld [vmem:[#allocation8 + $0x50] sm:$0xff]  ;;  %v2093_v7 = vld [vmem:[#allocation8 + $0x28] sm:$0xff] }
 0x2de   :  { %1962 = vmatpush1.bf16.msra.mxu0 %v1961_v29  ;;  %2006 = vmatpush1.bf16.msra.mxu1 %v1961_v29  ;;  %v2095_v29 = vld [vmem:[#allocation8 + $0x20] sm:$0xff] }
 0x2df   :  { %1963 = vmatprep.subr.bf16.mxu0 %v3486_v54  ;;  %1991 = vmatprep.subr.bf16.mxu1 %v3486_v54 }
 0x2e2   :  { %v1837_v9 = vpop.f32.mrb[20].mxu1 }
 0x2e3   :  { %v1346_v28 = vpop.f32.mrb[21].mxu1 }
 0x2e4   :  { %v1964_v63 = vpack.c.bf16 %v1837_v9, %v1346_v28  ;;  %v2096_v9 = vld [vmem:[#allocation8 + $0x60] sm:$0xff]  ;;  %v2097_v28 = vld [vmem:[#allocation8 + $0x38] sm:$0xff] }
 0x2e6   :  { %1965 = vmatpush1.bf16.msra.mxu0 %v1964_v63  ;;  %2007 = vmatpush1.bf16.msra.mxu1 %v1964_v63  ;;  %v2098_v63 = vld [vmem:[#allocation8 + $0x78] sm:$0xff] }
 0x2e7   :  { %1966 = vmatprep.subr.bf16.mxu0 %v3486_v54  ;;  %1992 = vmatprep.subr.bf16.mxu1 %v3486_v54 }
 0x2ea   :  { %v1840_v45 = vpop.f32.mrb[22].mxu1 }
 0x2eb   :  { %v1356_v41 = vpop.f32.mrb[23].mxu1 }
 0x2ec   :  { %v1967_v17 = vpack.c.bf16 %v1840_v45, %v1356_v41  ;;  %v2099_v45 = vld [vmem:[#allocation8 + $0x30] sm:$0xff] }
 0x2ed   :  { %v2100_v41 = vld [vmem:[#allocation8 + $0x70] sm:$0xff] }
 0x2ee   :  { %1968 = vmatpush1.bf16.msra.mxu0 %v1967_v17  ;;  %2008 = vmatpush1.bf16.msra.mxu1 %v1967_v17  ;;  %v2101_v17 = vld [vmem:[#allocation8 + $0x88] sm:$0xff] }
 0x2ef   :  { %1969 = vmatprep.subr.bf16.mxu0 %v3486_v54  ;;  %1993 = vmatprep.subr.bf16.mxu1 %v3486_v54 }
 0x2f2   :  { %v1843_v15 = vpop.f32.mrb[24].mxu1 }
 0x2f3   :  { %v1366_v8 = vpop.f32.mrb[25].mxu1 }
 0x2f4   :  { %v1970_v42 = vpack.c.bf16 %v1843_v15, %v1366_v8  ;;  %v2102_v15 = vld [vmem:[#allocation8 + $0x80] sm:$0xff]  ;;  %v2103_v8 = vld [vmem:[#allocation8 + $0x98] sm:$0xff] }
 0x2f6   :  { %1971 = vmatpush1.bf16.msra.mxu0 %v1970_v42  ;;  %2009 = vmatpush1.bf16.msra.mxu1 %v1970_v42  ;;  %v2104_v42 = vld [vmem:[#allocation8 + $0x90] sm:$0xff] }
 0x2f7   :  { %1972 = vmatprep.subr.bf16.mxu0 %v3486_v54  ;;  %1994 = vmatprep.subr.bf16.mxu1 %v3486_v54 }
 0x2fa   :  { %v1846_v12 = vpop.f32.mrb[26].mxu1 }
 0x2fb   :  { %v1376_v43 = vpop.f32.mrb[27].mxu1 }
 0x2fc   :  { %v1973_v59 = vpack.c.bf16 %v1846_v12, %v1376_v43  ;;  %v2105_v12 = vld [vmem:[#allocation8 + $0xa8] sm:$0xff]  ;;  %v2106_v43 = vld [vmem:[#allocation8 + $0xa0] sm:$0xff] }
 0x2fe   :  { %1974 = vmatpush1.bf16.msra.mxu0 %v1973_v59  ;;  %2010 = vmatpush1.bf16.msra.mxu1 %v1973_v59  ;;  %v2107_v59 = vld [vmem:[#allocation8 + $0xb8] sm:$0xff] }
 0x2ff   :  { %1975 = vmatprep.subr.bf16.mxu0 %v3486_v54  ;;  %1995 = vmatprep.subr.bf16.mxu1 %v3486_v54 }
 0x302   :  { %v1849_v31 = vpop.f32.mrb[28].mxu1 }
 0x303   :  { %v1386_v61 = vpop.f32.mrb[29].mxu1 }
 0x304   :  { %v1976_v36 = vpack.c.bf16 %v1849_v31, %v1386_v61  ;;  %v2108_v31 = vld [vmem:[#allocation8 + $0xb0] sm:$0xff]  ;;  %v2109_v61 = vld [vmem:[#allocation8 + $0xc8] sm:$0xff] }
 0x306   :  { %1977 = vmatpush1.bf16.msra.mxu0 %v1976_v36  ;;  %2011 = vmatpush1.bf16.msra.mxu1 %v1976_v36  ;;  %v2110_v36 = vld [vmem:[#allocation8 + $0xc0] sm:$0xff] }
 0x307   :  { %1978 = vmatprep.subr.bf16.mxu0 %v3486_v54  ;;  %1996 = vmatprep.subr.bf16.mxu1 %v3486_v54  ;;  %v2094_v54 = vld [vmem:[#allocation8 + $0x68] sm:$0xff] }
 0x30a   :  { %v1852_v11 = vpop.f32.mrb[30].mxu1 }
 0x30b   :  { %v1396_v50 = vpop.f32.mrb[31].mxu1 }
 0x30c   :  { %v1979_v40 = vpack.c.bf16 %v1852_v11, %v1396_v50  ;;  %v2111_v11 = vld [vmem:[#allocation8 + $0xd0] sm:$0xff] }
 0x30e   :  { %1980 = vmatpush1.bf16.msra.mxu0 %v1979_v40  ;;  %2012 = vmatpush1.bf16.msra.mxu1 %v1979_v40 }
 0x311   :  { %1477 = vmatmul.mubr.f32.vlgmr.msra.gmra.mrb[64].mxu0 %v2087_v47  ;;  %1497 = vmatmul.mubr.f32.vlgmr.msra.gmra.mrb[32].mxu1 %v2088_v56 }
 0x312   :  { %1481 = vmatprep.mubr.f32.mxu0 %v2089_v60  ;;  %1501 = vmatprep.mubr.f32.mxu1 %v2090_v52 }
 0x315   :  { %1482 = vmatmul.mubr.f32.gmra.mrb[66].mxu0 %v2091_v62  ;;  %1502 = vmatmul.mubr.f32.gmra.mrb[34].mxu1 %v2092_v14 }
 0x316   :  { %1486 = vmatprep.mubr.f32.mxu0 %v2093_v7  ;;  %1506 = vmatprep.mubr.f32.mxu1 %v2094_v54 }
 0x319   :  { %1487 = vmatmul.mubr.f32.gmra.mrb[68].mxu0 %v2095_v29  ;;  %1507 = vmatmul.mubr.f32.gmra.mrb[36].mxu1 %v2096_v9 }
 0x31a   :  { %1491 = vmatprep.mubr.f32.mxu0 %v2097_v28  ;;  %1511 = vmatprep.mubr.f32.mxu1 %v2098_v63 }
 0x31d   :  { %1492 = vmatmul.mubr.f32.gmra.mrb[70].mxu0 %v2099_v45  ;;  %1512 = vmatmul.mubr.f32.gmra.mrb[38].mxu1 %v2100_v41 }
 0x31e   :  { %1516 = vmatprep.mubr.f32.mxu1 %v2101_v17 }
 0x321   :  { %1517 = vmatmul.mubr.f32.gmra.mrb[40].mxu1 %v2102_v15 }
 0x322   :  { %1521 = vmatprep.mubr.f32.mxu1 %v2103_v8 }
 0x325   :  { %1522 = vmatmul.mubr.f32.gmra.mrb[42].mxu1 %v2104_v42 }
 0x326   :  { %1526 = vmatprep.mubr.f32.mxu1 %v2105_v12 }
 0x329   :  { %1527 = vmatmul.mubr.f32.gmra.mrb[44].mxu1 %v2106_v43 }
 0x32a   :  { %1531 = vmatprep.mubr.f32.mxu1 %v2107_v59 }
 0x32d   :  { %1532 = vmatmul.mubr.f32.gmra.mrb[46].mxu1 %v2108_v31 }
 0x32e   :  { %1536 = vmatprep.mubr.f32.mxu1 %v2109_v61 }
 0x331   :  { %1537 = vmatmul.mubr.f32.gmra.mrb[48].mxu1 %v2110_v36 }
 0x332   :  { %1541 = vmatprep.mubr.f32.mxu1 %v2850_v51 }
 0x335   :  { %1542 = vmatmul.mubr.f32.gmra.mrb[50].mxu1 %v2111_v11 }
 0x336   :  { %1546 = vmatprep.mubr.f32.mxu1 %v2875_v53 }
 0x339   :  { %1547 = vmatmul.mubr.f32.gmra.mrb[52].mxu1 %v2872_v4 }
 0x33a   :  { %1551 = vmatprep.mubr.f32.mxu1 %v2884_v33 }
 0x33d   :  { %1552 = vmatmul.mubr.f32.gmra.mrb[54].mxu1 %v2881_v27 }
 0x33e   :  { %1556 = vmatprep.mubr.f32.mxu1 %v2909_v23 }
 0x341   :  { %1557 = vmatmul.mubr.f32.gmra.mrb[56].mxu1 %v2906_v48 }
 0x342   :  { %1561 = vmatprep.mubr.f32.mxu1 %v2919_v5 }
 0x345   :  { %1562 = vmatmul.mubr.f32.gmra.mrb[58].mxu1 %v2916_v1 }
 0x346   :  { %1566 = vmatprep.mubr.f32.mxu1 %v2944_v37 }
 0x349   :  { %1567 = vmatmul.mubr.f32.gmra.mrb[60].mxu1 %v2941_v13 }
 0x34a   :  { %1571 = vmatprep.mubr.f32.mxu1 %v2953_v18 }
 0x34d   :  { %1572 = vmatmul.mubr.f32.gmra.mrb[62].mxu1 %v2950_v16 }
 0x34e   :  { %1576 = vmatprep.mubr.f32.mxu1 %v2978_v35 }
 0x351   :  { %1577 = vmatmul.mubr.f32.gmra.mrb[64].mxu1 %v2975_v3 }
 0x352   :  { %1581 = vmatprep.mubr.f32.mxu1 %v2987_v57 }
 0x355   :  { %1582 = vmatmul.mubr.f32.gmra.mrb[66].mxu1 %v2984_v55 }
 0x356   :  { %1586 = vmatprep.mubr.f32.mxu1 %v3012_v44 }
 0x359   :  { %1587 = vmatmul.mubr.f32.gmra.mrb[68].mxu1 %v3009_v20 }
 0x35a   :  { %1591 = vmatprep.mubr.f32.mxu1 %v3021_v24 }
 0x35d   :  { %1592 = vmatmul.mubr.f32.gmra.mrb[70].mxu1 %v3018_v6 }
 0x35e   :  { %1596 = vmatprep.mubr.f32.mxu1 %v3036_v46 }
 0x361   :  { %1597 = vmatmul.mubr.f32.gmra.mrb[72].mxu1 %v3033_v22 }
 0x362   :  { %1601 = vmatprep.mubr.f32.mxu1 %v3045_v38 }
 0x365   :  { %1602 = vmatmul.mubr.f32.gmra.mrb[74].mxu1 %v3042_v26 }
 0x366   :  { %1606 = vmatprep.mubr.f32.mxu1 %v3058_v58 }
 0x369   :  { %1607 = vmatmul.mubr.f32.gmra.mrb[76].mxu1 %v3055_v0 }
 0x36a   :  { %1611 = vmatprep.mubr.f32.mxu1 %v3067_v2 }
 0x36d   :  { %1612 = vmatmul.mubr.f32.gmra.mrb[78].mxu1 %v3064_v21 }
 0x36e   :  { %1616 = vmatprep.mubr.f32.mxu1 %v3080_v25 }
 0x371   :  { %1617 = vmatmul.mubr.f32.gmra.mrb[80].mxu1 %v3077_v19 }
 0x372   :  { %1621 = vmatprep.mubr.f32.mxu1 %v3089_v10 }
 0x375   :  { %1622 = vmatmul.mubr.f32.gmra.mrb[82].mxu1 %v3086_v32 }
 0x376   :  { %1626 = vmatprep.mubr.f32.mxu1 %v3101_v34 }
 0x379   :  { %1627 = vmatmul.mubr.f32.gmra.mrb[84].mxu1 %v3098_v49 }
 0x37a   :  { %1631 = vmatprep.mubr.f32.mxu1 %v3109_v39 }
 0x37d   :  { %1632 = vmatmul.mubr.f32.gmra.mrb[86].mxu1 %v3106_v30 }
 0x37e   :  { %2189 = shalt.err (!%p2186_p0)
}
 0x37f   :  { %s2190_s16 = scalar_lea.hbm %s3409_s6, 8192 }
 0x380   :  { %p2191_p1 = scmp.ne.s32.totalorder %s3409_s6, %s2190_s16  ;;  %p2194_p2 = scmp.lt.u32.totalorder %s2190_s16, %s3409_s6 }
 0x382   :  { %p2196_p3 = pnand %p2194_p2, %p2191_p1 }
 0x384   :  { %2199 = shalt.err (!%p2196_p3)
}
 0x385   :  { %1682 = dma.vmem_to_hbm [thread:$0]  %s1677_s8, 8192, %s3409_s6, [#allocation4], %s2210_s1, %s2210_s1, %s2211_s21  }
 0x386   :  { %v3273_v51 = vld [vmem:[%s3407_s4] ss:$0 sm:$0xff] }
 0x3e4   :  { %v1478_v4 = vpop.f32.mrb[64].mxu0  ;;  %v1498_v53 = vpop.f32.mrb[32].mxu1 }
 0x3e5   :  { %v1479_v27 = vadd.f32 %v3273_v51, %v1478_v4  ;;  %v1499_v33 = vadd.f32 %v3273_v51, %v1498_v53  ;;  %v1480_v48 = vpop.f32.mrb[65].mxu0  ;;  %v1500_v23 = vpop.f32.mrb[33].mxu1 }
 0x3e7   :  { %1637 = vst [vmem:[%s3408_s5] sm:$0xff] %v1479_v27  ;;  %1641 = vst [vmem:[%s3408_s5 + $0x20] sm:$0xff] %v1499_v33 }
 0x3e8   :  { %v1483_v1 = vpop.f32.mrb[66].mxu0  ;;  %v1503_v5 = vpop.f32.mrb[34].mxu1 }
 0x3e9   :  { %v1484_v13 = vadd.f32 %v3273_v51, %v1483_v1  ;;  %v1504_v37 = vadd.f32 %v3273_v51, %v1503_v5  ;;  %v1485_v16 = vpop.f32.mrb[67].mxu0  ;;  %v1505_v18 = vpop.f32.mrb[35].mxu1 }
 0x3eb   :  { %1638 = vst [vmem:[%s3408_s5 + $0x8] sm:$0xff] %v1484_v13  ;;  %1642 = vst [vmem:[%s3408_s5 + $0x28] sm:$0xff] %v1504_v37 }
 0x3ec   :  { %v1488_v3 = vpop.f32.mrb[68].mxu0  ;;  %v1508_v35 = vpop.f32.mrb[36].mxu1 }
 0x3ed   :  { %v1489_v55 = vadd.f32 %v3273_v51, %v1488_v3  ;;  %v1509_v57 = vadd.f32 %v3273_v51, %v1508_v35  ;;  %v1490_v20 = vpop.f32.mrb[69].mxu0  ;;  %v1510_v44 = vpop.f32.mrb[37].mxu1 }
 0x3ef   :  { %1639 = vst [vmem:[%s3408_s5 + $0x10] sm:$0xff] %v1489_v55  ;;  %1643 = vst [vmem:[%s3408_s5 + $0x30] sm:$0xff] %v1509_v57 }
 0x3f0   :  { %v1493_v6 = vpop.f32.mrb[70].mxu0  ;;  %v1513_v24 = vpop.f32.mrb[38].mxu1 }
 0x3f1   :  { %v1494_v22 = vadd.f32 %v3273_v51, %v1493_v6  ;;  %v1514_v46 = vadd.f32 %v3273_v51, %v1513_v24  ;;  %v1495_v26 = vpop.f32.mrb[71].mxu0  ;;  %v1515_v38 = vpop.f32.mrb[39].mxu1 }
 0x3f3   :  { %1640 = vst [vmem:[%s3408_s5 + $0x18] sm:$0xff] %v1494_v22  ;;  %1644 = vst [vmem:[%s3408_s5 + $0x38] sm:$0xff] %v1514_v46 }
 0x3f4   :  { %v1518_v0 = vpop.f32.mrb[40].mxu1 }
 0x3f5   :  { %v1519_v58 = vadd.f32 %v3273_v51, %v1518_v0  ;;  %v1520_v21 = vpop.f32.mrb[41].mxu1 }
 0x3f7   :  { %1645 = vst [vmem:[%s3408_s5 + $0x40] sm:$0xff] %v1519_v58 }
 0x3f8   :  { %v1523_v2 = vpop.f32.mrb[42].mxu1 }
 0x3f9   :  { %v1524_v19 = vadd.f32 %v3273_v51, %v1523_v2  ;;  %v1525_v25 = vpop.f32.mrb[43].mxu1 }
 0x3fb   :  { %1646 = vst [vmem:[%s3408_s5 + $0x48] sm:$0xff] %v1524_v19 }
 0x3fc   :  { %v1528_v32 = vpop.f32.mrb[44].mxu1 }
 0x3fd   :  { %v1529_v10 = vadd.f32 %v3273_v51, %v1528_v32  ;;  %v1530_v49 = vpop.f32.mrb[45].mxu1 }
 0x3ff   :  { %1647 = vst [vmem:[%s3408_s5 + $0x50] sm:$0xff] %v1529_v10 }
 0x400   :  { %v1533_v34 = vpop.f32.mrb[46].mxu1 }
 0x401   :  { %v1534_v30 = vadd.f32 %v3273_v51, %v1533_v34  ;;  %v1535_v39 = vpop.f32.mrb[47].mxu1 }
 0x403   :  { %1648 = vst [vmem:[%s3408_s5 + $0x58] sm:$0xff] %v1534_v30 }
 0x404   :  { %v1538_v50 = vpop.f32.mrb[48].mxu1 }
 0x405   :  { %v1539_v40 = vadd.f32 %v3273_v51, %v1538_v50  ;;  %v1540_v47 = vpop.f32.mrb[49].mxu1 }
 0x407   :  { %1649 = vst [vmem:[%s3408_s5 + $0x60] sm:$0xff] %v1539_v40 }
 0x408   :  { %v1543_v56 = vpop.f32.mrb[50].mxu1 }
 0x409   :  { %v1544_v60 = vadd.f32 %v3273_v51, %v1543_v56  ;;  %v1545_v52 = vpop.f32.mrb[51].mxu1 }
 0x40b   :  { %1650 = vst [vmem:[%s3408_s5 + $0x68] sm:$0xff] %v1544_v60 }
 0x40c   :  { %v1548_v62 = vpop.f32.mrb[52].mxu1 }
 0x40d   :  { %v1549_v14 = vadd.f32 %v3273_v51, %v1548_v62  ;;  %v1550_v7 = vpop.f32.mrb[53].mxu1 }
 0x40f   :  { %1651 = vst [vmem:[%s3408_s5 + $0x70] sm:$0xff] %v1549_v14 }
 0x410   :  { %v1553_v54 = vpop.f32.mrb[54].mxu1 }
 0x411   :  { %v1554_v29 = vadd.f32 %v3273_v51, %v1553_v54  ;;  %v1555_v9 = vpop.f32.mrb[55].mxu1 }
 0x413   :  { %1652 = vst [vmem:[%s3408_s5 + $0x78] sm:$0xff] %v1554_v29 }
 0x414   :  { %v1558_v28 = vpop.f32.mrb[56].mxu1 }
 0x415   :  { %v1559_v63 = vadd.f32 %v3273_v51, %v1558_v28  ;;  %v1560_v45 = vpop.f32.mrb[57].mxu1 }
 0x417   :  { %1653 = vst [vmem:[%s3408_s5 + $0x80] sm:$0xff] %v1559_v63 }
 0x418   :  { %v1563_v41 = vpop.f32.mrb[58].mxu1 }
 0x419   :  { %v1564_v17 = vadd.f32 %v3273_v51, %v1563_v41  ;;  %v1565_v15 = vpop.f32.mrb[59].mxu1 }
 0x41b   :  { %1654 = vst [vmem:[%s3408_s5 + $0x88] sm:$0xff] %v1564_v17 }
 0x41c   :  { %v1568_v8 = vpop.f32.mrb[60].mxu1 }
 0x41d   :  { %v1569_v42 = vadd.f32 %v3273_v51, %v1568_v8  ;;  %v1570_v12 = vpop.f32.mrb[61].mxu1 }
 0x41f   :  { %1655 = vst [vmem:[%s3408_s5 + $0x90] sm:$0xff] %v1569_v42 }
 0x420   :  { %v1573_v43 = vpop.f32.mrb[62].mxu1 }
 0x421   :  { %v1574_v59 = vadd.f32 %v3273_v51, %v1573_v43  ;;  %v1575_v31 = vpop.f32.mrb[63].mxu1 }
 0x423   :  { %1656 = vst [vmem:[%s3408_s5 + $0x98] sm:$0xff] %v1574_v59 }
 0x424   :  { %v1578_v61 = vpop.f32.mrb[64].mxu1 }
 0x425   :  { %v1579_v36 = vadd.f32 %v3273_v51, %v1578_v61  ;;  %v1580_v11 = vpop.f32.mrb[65].mxu1 }
 0x427   :  { %1657 = vst [vmem:[%s3408_s5 + $0xa0] sm:$0xff] %v1579_v36 }
 0x428   :  { %v1583_v4 = vpop.f32.mrb[66].mxu1 }
 0x429   :  { %v1584_v53 = vadd.f32 %v3273_v51, %v1583_v4  ;;  %v1585_v27 = vpop.f32.mrb[67].mxu1 }
 0x42b   :  { %1658 = vst [vmem:[%s3408_s5 + $0xa8] sm:$0xff] %v1584_v53 }
 0x42c   :  { %v1588_v33 = vpop.f32.mrb[68].mxu1 }
 0x42d   :  { %v1589_v48 = vadd.f32 %v3273_v51, %v1588_v33  ;;  %v1590_v23 = vpop.f32.mrb[69].mxu1 }
 0x42f   :  { %1659 = vst [vmem:[%s3408_s5 + $0xb0] sm:$0xff] %v1589_v48 }
 0x430   :  { %v1593_v1 = vpop.f32.mrb[70].mxu1 }
 0x431   :  { %v1594_v5 = vadd.f32 %v3273_v51, %v1593_v1  ;;  %v1595_v13 = vpop.f32.mrb[71].mxu1 }
 0x433   :  { %1660 = vst [vmem:[%s3408_s5 + $0xb8] sm:$0xff] %v1594_v5 }
 0x434   :  { %v1598_v37 = vpop.f32.mrb[72].mxu1 }
 0x435   :  { %v1599_v16 = vadd.f32 %v3273_v51, %v1598_v37  ;;  %v1600_v18 = vpop.f32.mrb[73].mxu1 }
 0x437   :  { %1661 = vst [vmem:[%s3408_s5 + $0xc0] sm:$0xff] %v1599_v16 }
 0x438   :  { %v1603_v3 = vpop.f32.mrb[74].mxu1 }
 0x439   :  { %v1604_v35 = vadd.f32 %v3273_v51, %v1603_v3  ;;  %v1605_v55 = vpop.f32.mrb[75].mxu1 }
 0x43b   :  { %1662 = vst [vmem:[%s3408_s5 + $0xc8] sm:$0xff] %v1604_v35 }
 0x43c   :  { %v1608_v57 = vpop.f32.mrb[76].mxu1 }
 0x43d   :  { %v1609_v20 = vadd.f32 %v3273_v51, %v1608_v57  ;;  %v1610_v44 = vpop.f32.mrb[77].mxu1 }
 0x43f   :  { %1663 = vst [vmem:[%s3408_s5 + $0xd0] sm:$0xff] %v1609_v20 }
 0x440   :  { %v1613_v6 = vpop.f32.mrb[78].mxu1 }
 0x441   :  { %v1614_v24 = vadd.f32 %v3273_v51, %v1613_v6  ;;  %v1615_v22 = vpop.f32.mrb[79].mxu1 }
 0x443   :  { %1664 = vst [vmem:[%s3408_s5 + $0xd8] sm:$0xff] %v1614_v24 }
 0x444   :  { %v1618_v46 = vpop.f32.mrb[80].mxu1 }
 0x445   :  { %v1619_v26 = vadd.f32 %v3273_v51, %v1618_v46  ;;  %v1620_v38 = vpop.f32.mrb[81].mxu1 }
 0x447   :  { %1665 = vst [vmem:[%s3408_s5 + $0xe0] sm:$0xff] %v1619_v26 }
 0x448   :  { %v1623_v0 = vpop.f32.mrb[82].mxu1 }
 0x449   :  { %v1624_v58 = vadd.f32 %v3273_v51, %v1623_v0  ;;  %v1625_v21 = vpop.f32.mrb[83].mxu1 }
 0x44b   :  { %1666 = vst [vmem:[%s3408_s5 + $0xe8] sm:$0xff] %v1624_v58 }
 0x44c   :  { %v1628_v2 = vpop.f32.mrb[84].mxu1 }
 0x44d   :  { %v1629_v19 = vadd.f32 %v3273_v51, %v1628_v2  ;;  %v1630_v25 = vpop.f32.mrb[85].mxu1 }
 0x44f   :  { %1667 = vst [vmem:[%s3408_s5 + $0xf0] sm:$0xff] %v1629_v19 }
 0x450   :  { %v1633_v32 = vpop.f32.mrb[86].mxu1 }
 0x451   :  { %v1634_v10 = vadd.f32 %v3273_v51, %v1633_v32  ;;  %v1635_v49 = vpop.f32.mrb[87].mxu1 }
 0x453   :  { %1668 = vst [vmem:[%s3408_s5 + $0xf8] sm:$0xff] %v1634_v10 }
 0x454   :  { %2204 = dma.done.wait [#allocation4], 8192  }
 0x455   :  { %2205 = vsyncadd [#allocation4], 4294959104 }
 0x456   :  { %1688 = vsyncpa [#allocation3], 1 }
 0x457   :  { %1689 = vsyncpa [#allocation6], 1 }
 0x458   :  { %1690 = vsyncpa [#allocation4], 1 }

</bundles_post_ra>
